<compile_context>
chip_gen: v7x
topology: tpu7x:2x2x1
jax: 0.10.0
libtpu: 0.0.40
codegen_flags: <defaults>
</compile_context>

<pallas_src>
import functools

import jax
import jax.numpy as jnp
from jax.experimental import pallas as pl
from jax.experimental.pallas import tpu as pltpu

EPS = 1e-5
GROUPS = 8
CH = 128
CIN_G = CH // GROUPS      # 16
KK = 9 * CH               # 1152: taps folded into the contraction dim
VMEM_LIMIT = 32 * 1024 * 1024


# ----------------------------- Pallas kernels -----------------------------

def _conv1_stats_kernel(xt_ref, w1_ref, y1_ref, sum1_ref, sq1_ref):
    """Phase A: grouped 3x3/s2 conv as one bf16 matmul + BN1 stats accumulation."""
    i = pl.program_id(0)

    @pl.when(i == 0)
    def _():
        sum1_ref[...] = jnp.zeros_like(sum1_ref)
        sq1_ref[...] = jnp.zeros_like(sq1_ref)

    acc = jnp.dot(xt_ref[...], w1_ref[...], preferred_element_type=jnp.float32)
    y1_ref[...] = acc
    sum1_ref[...] += jnp.sum(acc, axis=0, keepdims=True)
    sq1_ref[...] += jnp.sum(acc * acc, axis=0, keepdims=True)


def _bn1_relu_conv2_stats_kernel(y1_ref, s1_ref, w2_ref, sum2_ref, sq2_ref,
                                 *, m_true, tile_m, needs_mask):
    """Phase B: apply BN1 scale/shift, ReLU, 1x1 conv; accumulate BN2 stats."""
    i = pl.program_id(0)

    @pl.when(i == 0)
    def _():
        sum2_ref[...] = jnp.zeros_like(sum2_ref)
        sq2_ref[...] = jnp.zeros_like(sq2_ref)

    y = y1_ref[...] * s1_ref[0:1, :] + s1_ref[1:2, :]
    y = jnp.maximum(y, 0.0)
    z = jnp.dot(y, w2_ref[...], preferred_element_type=jnp.float32)
    if needs_mask:  # static: only emitted when M was padded up to the tile grid
        row = i * tile_m + jax.lax.broadcasted_iota(jnp.int32, z.shape, 0)
        z = jnp.where(row < m_true, z, 0.0)
    sum2_ref[...] += jnp.sum(z, axis=0, keepdims=True)
    sq2_ref[...] += jnp.sum(z * z, axis=0, keepdims=True)


def _final_kernel(y1_ref, s1_ref, w2_ref, s2_ref, o_ref):
    """Phase C: recompute BN1-apply/ReLU/1x1 conv and apply BN2 scale/shift."""
    y = y1_ref[...] * s1_ref[0:1, :] + s1_ref[1:2, :]
    y = jnp.maximum(y, 0.0)
    z = jnp.dot(y, w2_ref[...], preferred_element_type=jnp.float32)
    o_ref[...] = z * s2_ref[0:1, :] + s2_ref[1:2, :]


# ------------------------------ Host helpers -------------------------------

def _dense_folded_w1(w1_grouped):
    """(Cout=128, Cin_g=16, 3, 3) grouped weight -> (1152, 128) bf16 dense
    block-diagonal weight with the 9 taps folded along the contraction dim."""
    wg = w1_grouped.reshape(GROUPS, CIN_G, CIN_G, 3, 3)        # (g, o, i, kh, kw)
    eye = jnp.eye(GROUPS, dtype=w1_grouped.dtype)              # (g, f)
    dense = jnp.einsum("goihw,gf->hwfigo", wg, eye)            # (3,3,f,i,g,o)
    return dense.reshape(KK, CH).astype(jnp.bfloat16)


def _im2col_s2_bf16(x_nchw):
    """Build the stride-2 3x3 taps, folded along the channel (K) dim, in bf16."""
    N, C, H, W = x_nchw.shape
    x = jnp.transpose(x_nchw, (0, 2, 3, 1)).astype(jnp.bfloat16)   # NHWC bf16
    xp = jnp.pad(x, ((0, 0), (1, 1), (1, 1), (0, 0)))
    Ho = (H + 2 - 3) // 2 + 1
    Wo = (W + 2 - 3) // 2 + 1
    M = N * Ho * Wo
    taps = []
    for kh in range(3):
        for kw in range(3):
            p = jax.lax.slice(
                xp,
                (0, kh, kw, 0),
                (N, kh + 2 * (Ho - 1) + 1, kw + 2 * (Wo - 1) + 1, C),
                (1, 2, 2, 1),
            )
            taps.append(p.reshape(M, C))
    return jnp.concatenate(taps, axis=1), (N, Ho, Wo)              # (M, 9*C)


@functools.partial(jax.jit, static_argnames=("tm_target",))
def model_forward(x_nchw, w1_grouped, g1, b1, w2_oihw, g2, b2, tm_target=512):
    N, C, H, W = x_nchw.shape
    assert C == CH

    xt, (_, Ho, Wo) = _im2col_s2_bf16(x_nchw)
    M = N * Ho * Wo

    # Balanced, 8-aligned M tiles (cap ~tm_target rows: keeps the per-step
    # working set a few MB -> fits v7x's smaller VMEM and still pipelines well).
    n_tiles = (M + tm_target - 1) // tm_target
    tm = (M + n_tiles - 1) // n_tiles
    tm = ((tm + 7) // 8) * 8
    m_pad = n_tiles * tm
    if m_pad != M:
        xt = jnp.pad(xt, ((0, m_pad - M), (0, 0)))   # zero rows: no BN1 pollution

    w1k = _dense_folded_w1(w1_grouped)                             # (1152,128) bf16
    w2d = jnp.transpose(w2_oihw[:, :, 0, 0], (1, 0)).astype(jnp.float32)
    g1r, b1r = g1.reshape(1, CH), b1.reshape(1, CH)
    g2r, b2r = g2.reshape(1, CH), b2.reshape(1, CH)

    cp_seq = pltpu.CompilerParams(dimension_semantics=("arbitrary",),
                                  vmem_limit_bytes=VMEM_LIMIT)
    cp_par = pltpu.CompilerParams(dimension_semantics=("parallel",),
                                  vmem_limit_bytes=VMEM_LIMIT)

    # ---- Phase A: conv1 + BN1 stats ----
    y1, sum1, sq1 = pl.pallas_call(
        _conv1_stats_kernel,
        out_shape=(
            jax.ShapeDtypeStruct((m_pad, CH), jnp.float32),
            jax.ShapeDtypeStruct((1, CH), jnp.float32),
            jax.ShapeDtypeStruct((1, CH), jnp.float32),
        ),
        grid=(n_tiles,),
        in_specs=[
            pl.BlockSpec((tm, KK), lambda i: (i, 0)),
            pl.BlockSpec((KK, CH), lambda i: (0, 0)),
        ],
        out_specs=(
            pl.BlockSpec((tm, CH), lambda i: (i, 0)),
            pl.BlockSpec((1, CH), lambda i: (0, 0)),
            pl.BlockSpec((1, CH), lambda i: (0, 0)),
        ),
        compiler_params=cp_seq,
    )(xt, w1k)

    inv_m = 1.0 / M
    mean1 = sum1 * inv_m
    var1 = sq1 * inv_m - mean1 * mean1
    scale1 = g1r * jax.lax.rsqrt(var1 + EPS)
    shift1 = b1r - mean1 * scale1
    s1 = jnp.concatenate([scale1, shift1], axis=0)                 # (2, CH)

    # ---- Phase B: BN1 apply + ReLU + 1x1 conv, BN2 stats only ----
    sum2, sq2 = pl.pallas_call(
        functools.partial(_bn1_relu_conv2_stats_kernel,
                          m_true=M, tile_m=tm, needs_mask=(m_pad != M)),
        out_shape=(
            jax.ShapeDtypeStruct((1, CH), jnp.float32),
            jax.ShapeDtypeStruct((1, CH), jnp.float32),
        ),
        grid=(n_tiles,),
        in_specs=[
            pl.BlockSpec((tm, CH), lambda i: (i, 0)),
            pl.BlockSpec((2, CH), lambda i: (0, 0)),
            pl.BlockSpec((CH, CH), lambda i: (0, 0)),
        ],
        out_specs=(
            pl.BlockSpec((1, CH), lambda i: (0, 0)),
            pl.BlockSpec((1, CH), lambda i: (0, 0)),
        ),
        compiler_params=cp_seq,
    )(y1, s1, w2d)

    mean2 = sum2 * inv_m
    var2 = sq2 * inv_m - mean2 * mean2
    scale2 = g2r * jax.lax.rsqrt(var2 + EPS)
    shift2 = b2r - mean2 * scale2
    s2 = jnp.concatenate([scale2, shift2], axis=0)                 # (2, CH)

    # ---- Phase C: recompute + BN2 apply (element-parallel) ----
    out_flat = pl.pallas_call(
        _final_kernel,
        out_shape=jax.ShapeDtypeStruct((m_pad, CH), jnp.float32),
        grid=(n_tiles,),
        in_specs=[
            pl.BlockSpec((tm, CH), lambda i: (i, 0)),
            pl.BlockSpec((2, CH), lambda i: (0, 0)),
            pl.BlockSpec((CH, CH), lambda i: (0, 0)),
            pl.BlockSpec((2, CH), lambda i: (0, 0)),
        ],
        out_specs=pl.BlockSpec((tm, CH), lambda i: (i, 0)),
        compiler_params=cp_par,
    )(y1, s1, w2d, s2)

    out = out_flat[:M].reshape(N, Ho, Wo, CH)
    return jnp.transpose(out, (0, 3, 1, 2))                        # NCHW


# ------------------------------ Reference ----------------------------------

def reference_forward(x_nchw, w1_grouped, g1, b1, w2_oihw, g2, b2,
                      *, matmul_bf16=True):
    """Pure-JAX reference (lax conv + training-mode BN).  With matmul_bf16=True
    the first conv uses bf16 operands + f32 accumulation, matching the kernel's
    precision choice; BN / ReLU / 1x1 conv stay in f32 in both paths."""
    xw, w1 = x_nchw, w1_grouped
    if matmul_bf16:
        xw = xw.astype(jnp.bfloat16)
        w1 = w1.astype(jnp.bfloat16)
    y = jax.lax.conv_general_dilated(
        xw, w1, window_strides=(2, 2), padding=((1, 1), (1, 1)),
        feature_group_count=GROUPS, dimension_numbers=("NCHW", "OIHW", "NCHW"),
        preferred_element_type=jnp.float32)
    m1 = jnp.mean(y, axis=(0, 2, 3), keepdims=True)
    v1 = jnp.var(y, axis=(0, 2, 3), keepdims=True)
    y = (y - m1) * jax.lax.rsqrt(v1 + EPS) * g1.reshape(1, -1, 1, 1) + b1.reshape(1, -1, 1, 1)
    y = jnp.maximum(y, 0.0)
    z = jax.lax.conv_general_dilated(
        y, w2_oihw, window_strides=(1, 1), padding=((0, 0), (0, 0)),
        dimension_numbers=("NCHW", "OIHW", "NCHW"),
        preferred_element_type=jnp.float32)
    m2 = jnp.mean(z, axis=(0, 2, 3), keepdims=True)
    v2 = jnp.var(z, axis=(0, 2, 3), keepdims=True)
    return (z - m2) * jax.lax.rsqrt(v2 + EPS) * g2.reshape(1, -1, 1, 1) + b2.reshape(1, -1, 1, 1)


if __name__ == "__main__":
    key = jax.random.PRNGKey(0)
    k_x, k_w1, k_g1, k_b1, k_w2, k_g2, k_b2 = jax.random.split(key, 7)

    # Small but channel-consistent shapes: N=2, C=128 (required by module), 16x16 spatial.
    x = jax.random.normal(k_x, (2, CH, 16, 16), jnp.float32)
    w1 = jax.random.normal(k_w1, (CH, CIN_G, 3, 3), jnp.float32) * 0.05
    g1 = 1.0 + 0.1 * jax.random.normal(k_g1, (CH,), jnp.float32)
    b1 = 0.1 * jax.random.normal(k_b1, (CH,), jnp.float32)
    w2 = jax.random.normal(k_w2, (CH, CH, 1, 1), jnp.float32) * 0.05
    g2 = 1.0 + 0.1 * jax.random.normal(k_g2, (CH,), jnp.float32)
    b2 = 0.1 * jax.random.normal(k_b2, (CH,), jnp.float32)

    ref_bf16 = reference_forward(x, w1, g1, b1, w2, g2, b2, matmul_bf16=True)
    ref_f32 = reference_forward(x, w1, g1, b1, w2, g2, b2, matmul_bf16=False)

    # Config 1: default tile target (single tile at this small size).
    out = jax.block_until_ready(model_forward(x, w1, g1, b1, w2, g2, b2))
    assert out.shape == (2, CH, 8, 8), out.shape
    assert jnp.allclose(out, ref_bf16, atol=2e-3, rtol=2e-3), \
        float(jnp.max(jnp.abs(out - ref_bf16)))
    assert jnp.allclose(out, ref_f32, atol=5e-2, rtol=5e-2), \
        float(jnp.max(jnp.abs(out - ref_f32)))

    # Config 2: small tile -> exercises the multi-tile grid, cross-tile BN
    # accumulation, and the padded-row masking path (M=128 -> 3 tiles of 48).
    out2 = jax.block_until_ready(
        model_forward(x, w1, g1, b1, w2, g2, b2, tm_target=48))
    assert jnp.allclose(out2, ref_bf16, atol=2e-3, rtol=2e-3), \
        float(jnp.max(jnp.abs(out2 - ref_bf16)))

    print("KERNEL_OK")
</pallas_src>

<mosaic_0001>
module attributes {stable_mosaic.version = 11 : i64} {
  func.func @_conv1_stats_kernel(%arg0: i32, %arg1: memref<128x1152xbf16, #tpu.memory_space<vmem>>, %arg2: memref<1152x128xbf16, #tpu.memory_space<vmem>>, %arg3: memref<128x128xf32, #tpu.memory_space<vmem>>, %arg4: memref<1x128xf32, #tpu.memory_space<vmem>>, %arg5: memref<1x128xf32, #tpu.memory_space<vmem>>) attributes {dimension_semantics = [#tpu.dimension_semantics<arbitrary>], iteration_bounds = array<i64: 1>, scalar_prefetch = 0 : i64, scratch_operands = 0 : i64, tpu.core_type = #tpu.core_type<tc>, window_params = [{transform_indices = @transform_0, window_bounds = array<i64: 128, 1152>}, {pipeline_mode = #tpu.pipeline_mode<synchronous>, transform_indices = @transform_1, window_bounds = array<i64: 1152, 128>}, {transform_indices = @transform_2, window_bounds = array<i64: 128, 128>}, {pipeline_mode = #tpu.pipeline_mode<synchronous>, transform_indices = @transform_3, window_bounds = array<i64: 1, 128>}, {pipeline_mode = #tpu.pipeline_mode<synchronous>, transform_indices = @transform_4, window_bounds = array<i64: 1, 128>}]} {
    %c0_i32 = arith.constant 0 : i32
    %0 = arith.cmpi eq, %arg0, %c0_i32 : i32
    %1 = arith.extui %0 : i1 to i32
    %c0_i32_0 = arith.constant 0 : i32
    %2 = arith.cmpi ne, %1, %c0_i32_0 : i32
    scf.if %2 {
      %cst_16 = arith.constant 0.000000e+00 : f32
      %18 = vector.broadcast %cst_16 : f32 to vector<1x128xf32>
      %c0_17 = arith.constant 0 : index
      %c0_18 = arith.constant 0 : index
      %19 = vector.load %arg4[%c0_17, %c0_18] : memref<1x128xf32, #tpu.memory_space<vmem>>, vector<1x128xf32>
      tpu.vector_store %arg4[%c0_17, %c0_18], %18 {strides = array<i32>} : memref<1x128xf32, #tpu.memory_space<vmem>>, vector<1x128xf32>,
      %cst_19 = arith.constant 0.000000e+00 : f32
      %20 = vector.broadcast %cst_19 : f32 to vector<1x128xf32>
      %c0_20 = arith.constant 0 : index
      %c0_21 = arith.constant 0 : index
      %21 = vector.load %arg5[%c0_20, %c0_21] : memref<1x128xf32, #tpu.memory_space<vmem>>, vector<1x128xf32>
      tpu.vector_store %arg5[%c0_20, %c0_21], %20 {strides = array<i32>} : memref<1x128xf32, #tpu.memory_space<vmem>>, vector<1x128xf32>,
    } else {
    }
    %c0 = arith.constant 0 : index
    %c0_1 = arith.constant 0 : index
    %3 = vector.load %arg1[%c0, %c0_1] : memref<128x1152xbf16, #tpu.memory_space<vmem>>, vector<128x1152xbf16>
    %c0_2 = arith.constant 0 : index
    %c0_3 = arith.constant 0 : index
    %4 = vector.load %arg2[%c0_2, %c0_3] : memref<1152x128xbf16, #tpu.memory_space<vmem>>, vector<1152x128xbf16>
    %cst = arith.constant dense<0.000000e+00> : vector<128x128xf32>
    %5 = tpu.matmul %3, %4, %cst {dimension_numbers = #tpu.dot_dimension_numbers<[1], [0], [0], [1], [0, 0, 1, 1], [], []>} : vector<128x1152xbf16>, vector<1152x128xbf16>, vector<128x128xf32> -> vector<128x128xf32>
    %c0_4 = arith.constant 0 : index
    %c0_5 = arith.constant 0 : index
    %6 = vector.load %arg3[%c0_4, %c0_5] : memref<128x128xf32, #tpu.memory_space<vmem>>, vector<128x128xf32>
    tpu.vector_store %arg3[%c0_4, %c0_5], %5 {strides = array<i32>} : memref<128x128xf32, #tpu.memory_space<vmem>>, vector<128x128xf32>,
    %c0_6 = arith.constant 0 : index
    %c0_7 = arith.constant 0 : index
    %7 = vector.load %arg4[%c0_6, %c0_7] : memref<1x128xf32, #tpu.memory_space<vmem>>, vector<1x128xf32>
    %cst_8 = arith.constant dense<0.000000e+00> : vector<128xf32>
    %8 = vector.multi_reduction <add>, %5, %cst_8 [0] : vector<128x128xf32> to vector<128xf32>
    %9 = vector.shape_cast %8 : vector<128xf32> to vector<1x128xf32>
    %10 = arith.addf %7, %9 : vector<1x128xf32>
    %c0_9 = arith.constant 0 : index
    %c0_10 = arith.constant 0 : index
    %11 = vector.load %arg4[%c0_9, %c0_10] : memref<1x128xf32, #tpu.memory_space<vmem>>, vector<1x128xf32>
    tpu.vector_store %arg4[%c0_9, %c0_10], %10 {strides = array<i32>} : memref<1x128xf32, #tpu.memory_space<vmem>>, vector<1x128xf32>,
    %c0_11 = arith.constant 0 : index
    %c0_12 = arith.constant 0 : index
    %12 = vector.load %arg5[%c0_11, %c0_12] : memref<1x128xf32, #tpu.memory_space<vmem>>, vector<1x128xf32>
    %13 = arith.mulf %5, %5 : vector<128x128xf32>
    %cst_13 = arith.constant dense<0.000000e+00> : vector<128xf32>
    %14 = vector.multi_reduction <add>, %13, %cst_13 [0] : vector<128x128xf32> to vector<128xf32>
    %15 = vector.shape_cast %14 : vector<128xf32> to vector<1x128xf32>
    %16 = arith.addf %12, %15 : vector<1x128xf32>
    %c0_14 = arith.constant 0 : index
    %c0_15 = arith.constant 0 : index
    %17 = vector.load %arg5[%c0_14, %c0_15] : memref<1x128xf32, #tpu.memory_space<vmem>>, vector<1x128xf32>
    tpu.vector_store %arg5[%c0_14, %c0_15], %16 {strides = array<i32>} : memref<1x128xf32, #tpu.memory_space<vmem>>, vector<1x128xf32>,
    return
  }
  func.func @transform_0(%arg0: i32) -> (i32, i32) {
    %c0_i32 = arith.constant 0 : i32
    %c0_i32_0 = arith.constant 0 : i32
    return %arg0, %c0_i32 : i32, i32
  }
  func.func @transform_1(%arg0: i32) -> (i32, i32) {
    %c0_i32 = arith.constant 0 : i32
    %c0_i32_0 = arith.constant 0 : i32
    %c0_i32_1 = arith.constant 0 : i32
    return %c0_i32, %c0_i32_0 : i32, i32
  }
  func.func @transform_2(%arg0: i32) -> (i32, i32) {
    %c0_i32 = arith.constant 0 : i32
    %c0_i32_0 = arith.constant 0 : i32
    return %arg0, %c0_i32 : i32, i32
  }
  func.func @transform_3(%arg0: i32) -> (i32, i32) {
    %c0_i32 = arith.constant 0 : i32
    %c0_i32_0 = arith.constant 0 : i32
    %c0_i32_1 = arith.constant 0 : i32
    return %c0_i32, %c0_i32_0 : i32, i32
  }
  func.func @transform_4(%arg0: i32) -> (i32, i32) {
    %c0_i32 = arith.constant 0 : i32
    %c0_i32_0 = arith.constant 0 : i32
    %c0_i32_1 = arith.constant 0 : i32
    return %c0_i32, %c0_i32_0 : i32, i32
  }
}

module attributes {stable_mosaic.version = 11 : i64} {
  func.func @_bn1_relu_conv2_stats_kernel(%arg0: i32, %arg1: memref<128x128xf32, #tpu.memory_space<vmem>>, %arg2: memref<2x128xf32, #tpu.memory_space<vmem>>, %arg3: memref<128x128xf32, #tpu.memory_space<vmem>>, %arg4: memref<1x128xf32, #tpu.memory_space<vmem>>, %arg5: memref<1x128xf32, #tpu.memory_space<vmem>>) attributes {dimension_semantics = [#tpu.dimension_semantics<arbitrary>], iteration_bounds = array<i64: 1>, scalar_prefetch = 0 : i64, scratch_operands = 0 : i64, tpu.core_type = #tpu.core_type<tc>, window_params = [{transform_indices = @transform_0, window_bounds = array<i64: 128, 128>}, {pipeline_mode = #tpu.pipeline_mode<synchronous>, transform_indices = @transform_1, window_bounds = array<i64: 2, 128>}, {pipeline_mode = #tpu.pipeline_mode<synchronous>, transform_indices = @transform_2, window_bounds = array<i64: 128, 128>}, {pipeline_mode = #tpu.pipeline_mode<synchronous>, transform_indices = @transform_3, window_bounds = array<i64: 1, 128>}, {pipeline_mode = #tpu.pipeline_mode<synchronous>, transform_indices = @transform_4, window_bounds = array<i64: 1, 128>}]} {
    %c0_i32 = arith.constant 0 : i32
    %0 = arith.cmpi eq, %arg0, %c0_i32 : i32
    %1 = arith.extui %0 : i1 to i32
    %c0_i32_0 = arith.constant 0 : i32
    %2 = arith.cmpi ne, %1, %c0_i32_0 : i32
    scf.if %2 {
      %cst_18 = arith.constant 0.000000e+00 : f32
      %25 = vector.broadcast %cst_18 : f32 to vector<1x128xf32>
      %c0_19 = arith.constant 0 : index
      %c0_20 = arith.constant 0 : index
      %26 = vector.load %arg4[%c0_19, %c0_20] : memref<1x128xf32, #tpu.memory_space<vmem>>, vector<1x128xf32>
      tpu.vector_store %arg4[%c0_19, %c0_20], %25 {strides = array<i32>} : memref<1x128xf32, #tpu.memory_space<vmem>>, vector<1x128xf32>,
      %cst_21 = arith.constant 0.000000e+00 : f32
      %27 = vector.broadcast %cst_21 : f32 to vector<1x128xf32>
      %c0_22 = arith.constant 0 : index
      %c0_23 = arith.constant 0 : index
      %28 = vector.load %arg5[%c0_22, %c0_23] : memref<1x128xf32, #tpu.memory_space<vmem>>, vector<1x128xf32>
      tpu.vector_store %arg5[%c0_22, %c0_23], %27 {strides = array<i32>} : memref<1x128xf32, #tpu.memory_space<vmem>>, vector<1x128xf32>,
    } else {
    }
    %c0 = arith.constant 0 : index
    %c0_1 = arith.constant 0 : index
    %3 = vector.load %arg1[%c0, %c0_1] : memref<128x128xf32, #tpu.memory_space<vmem>>, vector<128x128xf32>
    %c0_2 = arith.constant 0 : index
    %c0_3 = arith.constant 0 : index
    %4 = vector.load %arg2[%c0_2, %c0_3] : memref<2x128xf32, #tpu.memory_space<vmem>>, vector<1x128xf32>
    %5 = vector.broadcast %4 : vector<1x128xf32> to vector<128x128xf32>
    %6 = arith.mulf %3, %5 : vector<128x128xf32>
    %c1 = arith.constant 1 : index
    %c0_4 = arith.constant 0 : index
    %7 = vector.load %arg2[%c1, %c0_4] : memref<2x128xf32, #tpu.memory_space<vmem>>, vector<1x128xf32>
    %8 = vector.broadcast %7 : vector<1x128xf32> to vector<128x128xf32>
    %9 = arith.addf %6, %8 : vector<128x128xf32>
    %cst = arith.constant 0.000000e+00 : f32
    %10 = vector.broadcast %cst : f32 to vector<128x128xf32>
    %11 = arith.maximumf %9, %10 : vector<128x128xf32>
    %c0_5 = arith.constant 0 : index
    %c0_6 = arith.constant 0 : index
    %12 = vector.load %arg3[%c0_5, %c0_6] : memref<128x128xf32, #tpu.memory_space<vmem>>, vector<128x128xf32>
    %cst_7 = arith.constant dense<0.000000e+00> : vector<128x128xf32>
    %13 = tpu.matmul %11, %12, %cst_7 {dimension_numbers = #tpu.dot_dimension_numbers<[1], [0], [0], [1], [0, 0, 1, 1], [], []>} : vector<128x128xf32>, vector<128x128xf32>, vector<128x128xf32> -> vector<128x128xf32>
    %c0_8 = arith.constant 0 : index
    %c0_9 = arith.constant 0 : index
    %14 = vector.load %arg4[%c0_8, %c0_9] : memref<1x128xf32, #tpu.memory_space<vmem>>, vector<1x128xf32>
    %cst_10 = arith.constant dense<0.000000e+00> : vector<128xf32>
    %15 = vector.multi_reduction <add>, %13, %cst_10 [0] : vector<128x128xf32> to vector<128xf32>
    %16 = vector.shape_cast %15 : vector<128xf32> to vector<1x128xf32>
    %17 = arith.addf %14, %16 : vector<1x128xf32>
    %c0_11 = arith.constant 0 : index
    %c0_12 = arith.constant 0 : index
    %18 = vector.load %arg4[%c0_11, %c0_12] : memref<1x128xf32, #tpu.memory_space<vmem>>, vector<1x128xf32>
    tpu.vector_store %arg4[%c0_11, %c0_12], %17 {strides = array<i32>} : memref<1x128xf32, #tpu.memory_space<vmem>>, vector<1x128xf32>,
    %c0_13 = arith.constant 0 : index
    %c0_14 = arith.constant 0 : index
    %19 = vector.load %arg5[%c0_13, %c0_14] : memref<1x128xf32, #tpu.memory_space<vmem>>, vector<1x128xf32>
    %20 = arith.mulf %13, %13 : vector<128x128xf32>
    %cst_15 = arith.constant dense<0.000000e+00> : vector<128xf32>
    %21 = vector.multi_reduction <add>, %20, %cst_15 [0] : vector<128x128xf32> to vector<128xf32>
    %22 = vector.shape_cast %21 : vector<128xf32> to vector<1x128xf32>
    %23 = arith.addf %19, %22 : vector<1x128xf32>
    %c0_16 = arith.constant 0 : index
    %c0_17 = arith.constant 0 : index
    %24 = vector.load %arg5[%c0_16, %c0_17] : memref<1x128xf32, #tpu.memory_space<vmem>>, vector<1x128xf32>
    tpu.vector_store %arg5[%c0_16, %c0_17], %23 {strides = array<i32>} : memref<1x128xf32, #tpu.memory_space<vmem>>, vector<1x128xf32>,
    return
  }
  func.func @transform_0(%arg0: i32) -> (i32, i32) {
    %c0_i32 = arith.constant 0 : i32
    %c0_i32_0 = arith.constant 0 : i32
    return %arg0, %c0_i32 : i32, i32
  }
  func.func @transform_1(%arg0: i32) -> (i32, i32) {
    %c0_i32 = arith.constant 0 : i32
    %c0_i32_0 = arith.constant 0 : i32
    %c0_i32_1 = arith.constant 0 : i32
    return %c0_i32, %c0_i32_0 : i32, i32
  }
  func.func @transform_2(%arg0: i32) -> (i32, i32) {
    %c0_i32 = arith.constant 0 : i32
    %c0_i32_0 = arith.constant 0 : i32
    %c0_i32_1 = arith.constant 0 : i32
    return %c0_i32, %c0_i32_0 : i32, i32
  }
  func.func @transform_3(%arg0: i32) -> (i32, i32) {
    %c0_i32 = arith.constant 0 : i32
    %c0_i32_0 = arith.constant 0 : i32
    %c0_i32_1 = arith.constant 0 : i32
    return %c0_i32, %c0_i32_0 : i32, i32
  }
  func.func @transform_4(%arg0: i32) -> (i32, i32) {
    %c0_i32 = arith.constant 0 : i32
    %c0_i32_0 = arith.constant 0 : i32
    %c0_i32_1 = arith.constant 0 : i32
    return %c0_i32, %c0_i32_0 : i32, i32
  }
}

module attributes {stable_mosaic.version = 11 : i64} {
  func.func @_final_kernel(%arg0: i32, %arg1: memref<128x128xf32, #tpu.memory_space<vmem>>, %arg2: memref<2x128xf32, #tpu.memory_space<vmem>>, %arg3: memref<128x128xf32, #tpu.memory_space<vmem>>, %arg4: memref<2x128xf32, #tpu.memory_space<vmem>>, %arg5: memref<128x128xf32, #tpu.memory_space<vmem>>) attributes {dimension_semantics = [#tpu.dimension_semantics<parallel>], iteration_bounds = array<i64: 1>, scalar_prefetch = 0 : i64, scratch_operands = 0 : i64, tpu.core_type = #tpu.core_type<tc>, window_params = [{transform_indices = @transform_0, window_bounds = array<i64: 128, 128>}, {pipeline_mode = #tpu.pipeline_mode<synchronous>, transform_indices = @transform_1, window_bounds = array<i64: 2, 128>}, {pipeline_mode = #tpu.pipeline_mode<synchronous>, transform_indices = @transform_2, window_bounds = array<i64: 128, 128>}, {pipeline_mode = #tpu.pipeline_mode<synchronous>, transform_indices = @transform_3, window_bounds = array<i64: 2, 128>}, {transform_indices = @transform_4, window_bounds = array<i64: 128, 128>}]} {
    %c0 = arith.constant 0 : index
    %c0_0 = arith.constant 0 : index
    %0 = vector.load %arg1[%c0, %c0_0] : memref<128x128xf32, #tpu.memory_space<vmem>>, vector<128x128xf32>
    %c0_1 = arith.constant 0 : index
    %c0_2 = arith.constant 0 : index
    %1 = vector.load %arg2[%c0_1, %c0_2] : memref<2x128xf32, #tpu.memory_space<vmem>>, vector<1x128xf32>
    %2 = vector.broadcast %1 : vector<1x128xf32> to vector<128x128xf32>
    %3 = arith.mulf %0, %2 : vector<128x128xf32>
    %c1 = arith.constant 1 : index
    %c0_3 = arith.constant 0 : index
    %4 = vector.load %arg2[%c1, %c0_3] : memref<2x128xf32, #tpu.memory_space<vmem>>, vector<1x128xf32>
    %5 = vector.broadcast %4 : vector<1x128xf32> to vector<128x128xf32>
    %6 = arith.addf %3, %5 : vector<128x128xf32>
    %cst = arith.constant 0.000000e+00 : f32
    %7 = vector.broadcast %cst : f32 to vector<128x128xf32>
    %8 = arith.maximumf %6, %7 : vector<128x128xf32>
    %c0_4 = arith.constant 0 : index
    %c0_5 = arith.constant 0 : index
    %9 = vector.load %arg3[%c0_4, %c0_5] : memref<128x128xf32, #tpu.memory_space<vmem>>, vector<128x128xf32>
    %cst_6 = arith.constant dense<0.000000e+00> : vector<128x128xf32>
    %10 = tpu.matmul %8, %9, %cst_6 {dimension_numbers = #tpu.dot_dimension_numbers<[1], [0], [0], [1], [0, 0, 1, 1], [], []>} : vector<128x128xf32>, vector<128x128xf32>, vector<128x128xf32> -> vector<128x128xf32>
    %c0_7 = arith.constant 0 : index
    %c0_8 = arith.constant 0 : index
    %11 = vector.load %arg4[%c0_7, %c0_8] : memref<2x128xf32, #tpu.memory_space<vmem>>, vector<1x128xf32>
    %12 = vector.broadcast %11 : vector<1x128xf32> to vector<128x128xf32>
    %13 = arith.mulf %10, %12 : vector<128x128xf32>
    %c1_9 = arith.constant 1 : index
    %c0_10 = arith.constant 0 : index
    %14 = vector.load %arg4[%c1_9, %c0_10] : memref<2x128xf32, #tpu.memory_space<vmem>>, vector<1x128xf32>
    %15 = vector.broadcast %14 : vector<1x128xf32> to vector<128x128xf32>
    %16 = arith.addf %13, %15 : vector<128x128xf32>
    %c0_11 = arith.constant 0 : index
    %c0_12 = arith.constant 0 : index
    %17 = vector.load %arg5[%c0_11, %c0_12] : memref<128x128xf32, #tpu.memory_space<vmem>>, vector<128x128xf32>
    tpu.vector_store %arg5[%c0_11, %c0_12], %16 {strides = array<i32>} : memref<128x128xf32, #tpu.memory_space<vmem>>, vector<128x128xf32>,
    return
  }
  func.func @transform_0(%arg0: i32) -> (i32, i32) {
    %c0_i32 = arith.constant 0 : i32
    %c0_i32_0 = arith.constant 0 : i32
    return %arg0, %c0_i32 : i32, i32
  }
  func.func @transform_1(%arg0: i32) -> (i32, i32) {
    %c0_i32 = arith.constant 0 : i32
    %c0_i32_0 = arith.constant 0 : i32
    %c0_i32_1 = arith.constant 0 : i32
    return %c0_i32, %c0_i32_0 : i32, i32
  }
  func.func @transform_2(%arg0: i32) -> (i32, i32) {
    %c0_i32 = arith.constant 0 : i32
    %c0_i32_0 = arith.constant 0 : i32
    %c0_i32_1 = arith.constant 0 : i32
    return %c0_i32, %c0_i32_0 : i32, i32
  }
  func.func @transform_3(%arg0: i32) -> (i32, i32) {
    %c0_i32 = arith.constant 0 : i32
    %c0_i32_0 = arith.constant 0 : i32
    %c0_i32_1 = arith.constant 0 : i32
    return %c0_i32, %c0_i32_0 : i32, i32
  }
  func.func @transform_4(%arg0: i32) -> (i32, i32) {
    %c0_i32 = arith.constant 0 : i32
    %c0_i32_0 = arith.constant 0 : i32
    return %arg0, %c0_i32 : i32, i32
  }
}

</mosaic_0001>

<bundles_post_ra>
// kernel: model_forward.4
= control target key start
LH: loop header
LB: loop body
LE: loop exit
PB: predicated region body
PF: predicated region fallthrough
CT: control target
= control target key end

     0   :  { %s650_s2 = inlined_call_operand.vmem [shape: f32[128,128], index: 2, kind: input, shape index: {}]   ;;  %s651_s0 = inlined_call_operand.vmem [shape: f32[128,128], index: 0, kind: input, shape index: {}]   ;;  %s652_s1 = inlined_call_operand.vmem [shape: f32[2,128], index: 1, kind: input, shape index: {}]   ;;  %s653_s3 = inlined_call_operand.vmem [shape: f32[1,128], index: 3, kind: output, shape index: {0}]   ;;  %s654_s4 = inlined_call_operand.vmem [shape: f32[1,128], index: 4, kind: output, shape index: {1}]  }
   0x1   :  { %v96_v0 = vld [vmem:[%s650_s2] sm:$0xff]  ;;  %v97_v1 = vld [vmem:[%s650_s2 + $0x8] sm:$0xff]  ;;  %v98_v2 = vld [vmem:[%s650_s2 + $0x10] sm:$0xff] }
   0x2   :  { %v419_v3 = vpack.c.bf16 %v97_v1, %v96_v0  ;;  %v99_v4 = vld [vmem:[%s650_s2 + $0x18] sm:$0xff]  ;;  %v100_v6 = vld [vmem:[%s650_s2 + $0x20] sm:$0xff]  ;;  %v101_v7 = vld [vmem:[%s650_s2 + $0x28] sm:$0xff] }
   0x3   :  { %v423_v5 = vpack.c.bf16 %v99_v4, %v98_v2  ;;  %v427_v8 = vpack.c.bf16 %v101_v7, %v100_v6  ;;  %v22_v9 = vld [vmem:[%s651_s0] sm:$0xff]  ;;  %v102_v11 = vld [vmem:[%s650_s2 + $0x30] sm:$0xff]  ;;  %v103_v12 = vld [vmem:[%s650_s2 + $0x38] sm:$0xff] }
   0x4   :  { %420 = vmatprep.subr.bf16.mxu0 %v419_v3  ;;  %451 = vmatprep.subr.bf16.mxu1 %v419_v3  ;;  %v518_v10 = vld [vmem:[%s652_s1] ss:$0 sm:$0xff]  ;;  %v530_v14 = vld [vmem:[%s652_s1 + $0x1] ss:$0 sm:$0xff]  ;;  %v431_v16 = vpack.c.bf16 %v103_v12, %v102_v11  ;;  %v105_v19 = vld [vmem:[%s650_s2 + $0x48] sm:$0xff] }
   0x5   :  { %422 = vmatpush3.bf16.msra.mxu0 %v419_v3  ;;  %459 = vmatpush3.bf16.msra.mxu1 %v419_v3  ;;  %v43_v13 = vmul.f32 %v518_v10, %v22_v9  ;;  %v30_v17 = vld [vmem:[%s651_s0 + $0x40] sm:$0xff]  ;;  %v106_v23 = vld [vmem:[%s650_s2 + $0x50] sm:$0xff]  ;;  %v107_v24 = vld [vmem:[%s650_s2 + $0x58] sm:$0xff] }
   0x6   :  { %424 = vmatprep.subr.bf16.mxu0 %v423_v5  ;;  %452 = vmatprep.subr.bf16.mxu1 %v423_v5  ;;  %v104_v18 = vld [vmem:[%s650_s2 + $0x40] sm:$0xff]  ;;  %v51_v21 = vmul.f32 %v518_v10, %v30_v17  ;;  %v439_v27 = vpack.c.bf16 %v107_v24, %v106_v23  ;;  %v109_v29 = vld [vmem:[%s650_s2 + $0x68] sm:$0xff]  ;;  %v24_v33 = vld [vmem:[%s651_s0 + $0x10] sm:$0xff] }
   0x7   :  { %v64_v15 = vadd.f32 %v530_v14, %v43_v13  ;;  %v435_v22 = vpack.c.bf16 %v105_v19, %v104_v18  ;;  %v108_v28 = vld [vmem:[%s650_s2 + $0x60] sm:$0xff]  ;;  %v23_v30 = vld [vmem:[%s651_s0 + $0x8] sm:$0xff]  ;;  %v32_v34 = vld [vmem:[%s651_s0 + $0x50] sm:$0xff]  ;;  %v45_v41 = vmul.f32 %v518_v10, %v24_v33 }
   0x8   :  { %v72_v25 = vadd.f32 %v530_v14, %v51_v21  ;;  %v31_v31 = vld [vmem:[%s651_s0 + $0x48] sm:$0xff]  ;;  %v443_v32 = vpack.c.bf16 %v109_v29, %v108_v28  ;;  %v110_v35 = vld [vmem:[%s650_s2 + $0x70] sm:$0xff]  ;;  %v111_v36 = vld [vmem:[%s650_s2 + $0x78] sm:$0xff]  ;;  %v44_v37 = vmul.f32 %v518_v10, %v23_v30  ;;  %v53_v42 = vmul.f32 %v518_v10, %v32_v34 }
   0x9   :  { %426 = vmatpush3.bf16.msra.mxu0 %v423_v5  ;;  %460 = vmatpush3.bf16.msra.mxu1 %v423_v5  ;;  %v80_v20 = vmax.f32 %v64_v15, 0.0  ;;  %v25_v38 = vld [vmem:[%s651_s0 + $0x18] sm:$0xff]  ;;  %v26_v39 = vld [vmem:[%s651_s0 + $0x20] sm:$0xff]  ;;  %v52_v40 = vmul.f32 %v518_v10, %v31_v31  ;;  %v447_v44 = vpack.c.bf16 %v111_v36, %v110_v35  ;;  %v27_v49 = vld [vmem:[%s651_s0 + $0x28] sm:$0xff]  ;;  %v66_v53 = vadd.f32 %v530_v14, %v45_v41 }
   0xa   :  { %428 = vmatprep.subr.bf16.mxu0 %v427_v8  ;;  %453 = vmatprep.subr.bf16.mxu1 %v427_v8  ;;  %v88_v26 = vmax.f32 %v72_v25, 0.0  ;;  %v33_v43 = vld [vmem:[%s651_s0 + $0x58] sm:$0xff]  ;;  %v34_v45 = vld [vmem:[%s651_s0 + $0x60] sm:$0xff]  ;;  %v46_v46 = vmul.f32 %v518_v10, %v25_v38  ;;  %v47_v47 = vmul.f32 %v518_v10, %v26_v39  ;;  %v65_v48 = vadd.f32 %v530_v14, %v44_v37  ;;  %v28_v50 = vld [vmem:[%s651_s0 + $0x30] sm:$0xff] }
   0xb   :  { %395 = vmatprep.mubr.f32.mxu0 %v80_v20  ;;  %v73_v51 = vadd.f32 %v530_v14, %v52_v40  ;;  %v54_v52 = vmul.f32 %v518_v10, %v33_v43  ;;  %v74_v54 = vadd.f32 %v530_v14, %v53_v42  ;;  %v55_v55 = vmul.f32 %v518_v10, %v34_v45  ;;  %v35_v56 = vld [vmem:[%s651_s0 + $0x68] sm:$0xff]  ;;  %v36_v57 = vld [vmem:[%s651_s0 + $0x70] sm:$0xff]  ;;  %v29_v63 = vld [vmem:[%s651_s0 + $0x38] sm:$0xff] }
   0xc   :  { %407 = vmatprep.mubr.f32.mxu1 %v88_v26  ;;  %v67_v58 = vadd.f32 %v530_v14, %v46_v46  ;;  %v68_v59 = vadd.f32 %v530_v14, %v47_v47  ;;  %v48_v60 = vmul.f32 %v518_v10, %v27_v49  ;;  %v49_v61 = vmul.f32 %v518_v10, %v28_v50  ;;  %v37_v7 = vld [vmem:[%s651_s0 + $0x78] sm:$0xff] }
   0xd   :  { %430 = vmatpush3.bf16.msra.mxu0 %v427_v8  ;;  %461 = vmatpush3.bf16.msra.mxu1 %v427_v8  ;;  %v81_v62 = vmax.f32 %v65_v48, 0.0  ;;  %v89_v0 = vmax.f32 %v73_v51, 0.0  ;;  %v75_v1 = vadd.f32 %v530_v14, %v54_v52  ;;  %v56_v2 = vmul.f32 %v518_v10, %v35_v56 }
   0xe   :  { %432 = vmatprep.subr.bf16.mxu0 %v431_v16  ;;  %454 = vmatprep.subr.bf16.mxu1 %v431_v16  ;;  %v82_v3 = vmax.f32 %v66_v53, 0.0  ;;  %v90_v4 = vmax.f32 %v74_v54, 0.0  ;;  %v76_v5 = vadd.f32 %v530_v14, %v55_v55  ;;  %v57_v6 = vmul.f32 %v518_v10, %v36_v57 }
   0xf   :  { %v69_v8 = vadd.f32 %v530_v14, %v48_v60  ;;  %v50_v9 = vmul.f32 %v518_v10, %v29_v63  ;;  %v83_v11 = vmax.f32 %v67_v58, 0.0  ;;  %v91_v12 = vmax.f32 %v75_v1, 0.0 }
  0x10   :  { %v77_v13 = vadd.f32 %v530_v14, %v56_v2  ;;  %v58_v15 = vmul.f32 %v518_v10, %v37_v7  ;;  %v70_v17 = vadd.f32 %v530_v14, %v49_v61  ;;  %v92_v18 = vmax.f32 %v76_v5, 0.0 }
  0x11   :  { %434 = vmatpush3.bf16.msra.mxu0 %v431_v16  ;;  %462 = vmatpush3.bf16.msra.mxu1 %v431_v16  ;;  %v84_v16 = vmax.f32 %v68_v59, 0.0  ;;  %v78_v19 = vadd.f32 %v530_v14, %v57_v6  ;;  %v85_v20 = vmax.f32 %v69_v8, 0.0  ;;  %v71_v21 = vadd.f32 %v530_v14, %v50_v9 }
  0x12   :  { %436 = vmatprep.subr.bf16.mxu0 %v435_v22  ;;  %455 = vmatprep.subr.bf16.mxu1 %v435_v22  ;;  %v79_v23 = vadd.f32 %v530_v14, %v58_v15  ;;  %v86_v24 = vmax.f32 %v70_v17, 0.0 }
  0x13   :  { %v94_v10 = vmax.f32 %v78_v19, 0.0  ;;  %v87_v25 = vmax.f32 %v71_v21, 0.0 }
  0x14   :  { %v95_v26 = vmax.f32 %v79_v23, 0.0 }
  0x15   :  { %438 = vmatpush3.bf16.msra.mxu0 %v435_v22  ;;  %463 = vmatpush3.bf16.msra.mxu1 %v435_v22  ;;  %v93_v22 = vmax.f32 %v77_v13, 0.0 }
  0x16   :  { %440 = vmatprep.subr.bf16.mxu0 %v439_v27  ;;  %456 = vmatprep.subr.bf16.mxu1 %v439_v27 }
  0x19   :  { %442 = vmatpush3.bf16.msra.mxu0 %v439_v27  ;;  %464 = vmatpush3.bf16.msra.mxu1 %v439_v27  ;;  %v468_v27 = vmov 0.0  }
  0x1a   :  { %444 = vmatprep.subr.bf16.mxu0 %v443_v32  ;;  %457 = vmatprep.subr.bf16.mxu1 %v443_v32  ;;  %20 = vst [vmem:[%s653_s3] sm:$0x1] %v468_v27  ;;  %21 = vst [vmem:[%s654_s4] sm:$0x1] %v468_v27 }
  0x1d   :  { %446 = vmatpush3.bf16.msra.mxu0 %v443_v32  ;;  %465 = vmatpush3.bf16.msra.mxu1 %v443_v32 }
  0x1e   :  { %448 = vmatprep.subr.bf16.mxu0 %v447_v44  ;;  %458 = vmatprep.subr.bf16.mxu1 %v447_v44 }
  0x21   :  { %450 = vmatpush3.bf16.msra.mxu0 %v447_v44  ;;  %466 = vmatpush3.bf16.msra.mxu1 %v447_v44 }
  0x24   :  { %396 = vmatmul.mubr.f32.vlgmr.msra.gmra.mrb[0].mxu0 %v81_v62  ;;  %408 = vmatmul.mubr.f32.vlgmr.msra.gmra.mrb[0].mxu1 %v89_v0 }
  0x25   :  { %398 = vmatprep.mubr.f32.mxu0 %v82_v3  ;;  %410 = vmatprep.mubr.f32.mxu1 %v90_v4 }
  0x28   :  { %399 = vmatmul.mubr.f32.gmra.mrb[2].mxu0 %v83_v11  ;;  %411 = vmatmul.mubr.f32.gmra.mrb[2].mxu1 %v91_v12 }
  0x29   :  { %401 = vmatprep.mubr.f32.mxu0 %v84_v16  ;;  %413 = vmatprep.mubr.f32.mxu1 %v92_v18 }
  0x2c   :  { %402 = vmatmul.mubr.f32.gmra.mrb[4].mxu0 %v85_v20  ;;  %414 = vmatmul.mubr.f32.gmra.mrb[4].mxu1 %v93_v22 }
  0x2d   :  { %404 = vmatprep.mubr.f32.mxu0 %v86_v24  ;;  %416 = vmatprep.mubr.f32.mxu1 %v94_v10 }
  0x30   :  { %405 = vmatmul.mubr.f32.gmra.mrb[6].mxu0 %v87_v25  ;;  %417 = vmatmul.mubr.f32.gmra.mrb[6].mxu1 %v95_v26 }
  0xf7   :  { %v397_v14 = vpop.f32.mrb[0].mxu0  ;;  %v409_v28 = vpop.f32.mrb[0].mxu1 }
  0xf8   :  { %v283_v29 = vmul.f32 %v397_v14, %v397_v14  ;;  %v178_v30 = vpop.f32.mrb[1].mxu0  ;;  %v218_v31 = vpop.f32.mrb[1].mxu1  ;;  %v291_v3 = vmul.f32 %v409_v28, %v409_v28 }
  0xf9   :  { %v258_v32 = vadd.f32 %v397_v14, %v178_v30  ;;  %v282_v33 = vmul.f32 %v178_v30, %v178_v30  ;;  %v290_v0 = vmul.f32 %v218_v31, %v218_v31 }
  0xfb   :  { %v298_v34 = vadd.f32 %v283_v29, %v282_v33  ;;  %v400_v35 = vpop.f32.mrb[2].mxu0  ;;  %v412_v36 = vpop.f32.mrb[2].mxu1 }
  0xfc   :  { %v188_v37 = vpop.f32.mrb[3].mxu0  ;;  %v228_v38 = vpop.f32.mrb[3].mxu1  ;;  %v285_v41 = vmul.f32 %v400_v35, %v400_v35  ;;  %v293_v9 = vmul.f32 %v412_v36, %v412_v36 }
  0xfd   :  { %v259_v39 = vadd.f32 %v258_v32, %v188_v37  ;;  %v284_v40 = vmul.f32 %v188_v37, %v188_v37  ;;  %v292_v6 = vmul.f32 %v228_v38, %v228_v38  ;;  %v281_v37 = vld [vmem:[%s654_s4] sm:$0x1] }
  0xff   :  { %v299_v42 = vadd.f32 %v298_v34, %v284_v40  ;;  %v403_v43 = vpop.f32.mrb[4].mxu0  ;;  %v260_v44 = vadd.f32 %v400_v35, %v259_v39  ;;  %v415_v45 = vpop.f32.mrb[4].mxu1  ;;  %v257_v34 = vld [vmem:[%s653_s3] sm:$0x1] }
 0x100   :  { %v198_v46 = vpop.f32.mrb[5].mxu0  ;;  %v238_v47 = vpop.f32.mrb[5].mxu1  ;;  %v287_v51 = vmul.f32 %v403_v43, %v403_v43  ;;  %v295_v17 = vmul.f32 %v415_v45, %v415_v45 }
 0x101   :  { %v261_v48 = vadd.f32 %v260_v44, %v198_v46  ;;  %v286_v49 = vmul.f32 %v198_v46, %v198_v46  ;;  %v300_v50 = vadd.f32 %v299_v42, %v285_v41  ;;  %v294_v13 = vmul.f32 %v238_v47, %v238_v47 }
 0x103   :  { %v301_v52 = vadd.f32 %v300_v50, %v286_v49  ;;  %v406_v53 = vpop.f32.mrb[6].mxu0  ;;  %v262_v54 = vadd.f32 %v403_v43, %v261_v48  ;;  %v418_v55 = vpop.f32.mrb[6].mxu1 }
 0x104   :  { %v208_v56 = vpop.f32.mrb[7].mxu0  ;;  %v248_v57 = vpop.f32.mrb[7].mxu1  ;;  %v289_v61 = vmul.f32 %v406_v53, %v406_v53  ;;  %v297_v23 = vmul.f32 %v418_v55, %v418_v55 }
 0x105   :  { %v263_v58 = vadd.f32 %v262_v54, %v208_v56  ;;  %v288_v59 = vmul.f32 %v208_v56, %v208_v56  ;;  %v302_v60 = vadd.f32 %v301_v52, %v287_v51  ;;  %v296_v20 = vmul.f32 %v248_v57, %v248_v57 }
 0x107   :  { %v264_v62 = vadd.f32 %v406_v53, %v263_v58  ;;  %v303_v63 = vadd.f32 %v302_v60, %v288_v59 }
 0x109   :  { %v304_v1 = vadd.f32 %v303_v63, %v289_v61  ;;  %v265_v2 = vadd.f32 %v264_v62, %v218_v31 }
 0x10b   :  { %v305_v4 = vadd.f32 %v304_v1, %v290_v0  ;;  %v266_v5 = vadd.f32 %v409_v28, %v265_v2 }
 0x10d   :  { %v267_v7 = vadd.f32 %v266_v5, %v228_v38  ;;  %v306_v8 = vadd.f32 %v305_v4, %v291_v3 }
 0x10f   :  { %v307_v11 = vadd.f32 %v306_v8, %v292_v6  ;;  %v268_v12 = vadd.f32 %v412_v36, %v267_v7 }
 0x111   :  { %v269_v15 = vadd.f32 %v268_v12, %v238_v47  ;;  %v308_v16 = vadd.f32 %v307_v11, %v293_v9 }
 0x113   :  { %v309_v18 = vadd.f32 %v308_v16, %v294_v13  ;;  %v270_v19 = vadd.f32 %v415_v45, %v269_v15 }
 0x115   :  { %v271_v21 = vadd.f32 %v270_v19, %v248_v57  ;;  %v310_v22 = vadd.f32 %v309_v18, %v295_v17 }
 0x117   :  { %v272_v24 = vadd.f32 %v418_v55, %v271_v21  ;;  %v311_v10 = vadd.f32 %v310_v22, %v296_v20 }
 0x119   :  { %v273_v25 = vrot.slane %v272_v24, 4  ;;  %v312_v26 = vadd.f32 %v311_v10, %v297_v23 }
 0x11b   :  { %v274_v27 = vadd.f32 %v273_v25, %v272_v24  ;;  %v313_v14 = vrot.slane %v312_v26, 4 }
 0x11d   :  { %v275_v28 = vrot.slane %v274_v27, 2  ;;  %v314_v29 = vadd.f32 %v313_v14, %v312_v26 }
 0x11f   :  { %v276_v30 = vadd.f32 %v275_v28, %v274_v27  ;;  %v315_v31 = vrot.slane %v314_v29, 2 }
 0x121   :  { %v277_v32 = vrot.slane %v276_v30, 1  ;;  %v316_v33 = vadd.f32 %v315_v31, %v314_v29 }
 0x123   :  { %v278_v35 = vadd.f32 %v277_v32, %v276_v30  ;;  %v317_v36 = vrot.slane %v316_v33, 1 }
 0x125   :  { %v279_v38 = vadd.f32 %v278_v35, %v257_v34  ;;  %v318_v39 = vadd.f32 %v317_v36, %v316_v33 }
 0x127   :  { %280 = vst [vmem:[%s653_s3] sm:$0x1] %v279_v38  ;;  %v319_v40 = vadd.f32 %v318_v39, %v281_v37 }
 0x129   :  { %320 = vst [vmem:[%s654_s4] sm:$0x1] %v319_v40 }

// kernel: model_forward.3
= control target key start
LH: loop header
LB: loop body
LE: loop exit
PB: predicated region body
PF: predicated region fallthrough
CT: control target
= control target key end

     0   :  { %s2877_s1 = inlined_call_operand.vmem [shape: bf16[1152,128], index: 1, kind: input, shape index: {}]   ;;  %s2878_s0 = inlined_call_operand.vmem [shape: bf16[128,1152], index: 0, kind: input, shape index: {}]   ;;  %s2879_s3 = inlined_call_operand.vmem [shape: f32[1,128], index: 3, kind: output, shape index: {1}]   ;;  %s2880_s4 = inlined_call_operand.vmem [shape: f32[1,128], index: 4, kind: output, shape index: {2}]   ;;  %s2881_s2 = inlined_call_operand.vmem [shape: f32[128,128], index: 2, kind: output, shape index: {0}]  }
   0x1   :  { %v2087_v0 = vld [vmem:[%s2877_s1 + $0x40] sm:$0xff]   ;;  %v2091_v4 = vld [vmem:[%s2877_s1 + $0x48] sm:$0xff]   ;;  %v2095_v8 = vld [vmem:[%s2877_s1 + $0x50] sm:$0xff]  }
   0x2   :  { %v2088_v1 = vld [vmem:[%s2877_s1 + $0xc0] sm:$0xff]   ;;  %1766 = vmatprep.subr.bf16.mxu0 %v2087_v0  ;;  %v2092_v5 = vld [vmem:[%s2877_s1 + $0xc8] sm:$0xff]   ;;  %v2096_v9 = vld [vmem:[%s2877_s1 + $0xd0] sm:$0xff]  }
   0x3   :  { %v2089_v2 = vld [vmem:[%s2877_s1] sm:$0xff]   ;;  %1830 = vmatprep.subr.bf16.mxu1 %v2088_v1  ;;  %v2093_v6 = vld [vmem:[%s2877_s1 + $0x8] sm:$0xff]   ;;  %v2097_v10 = vld [vmem:[%s2877_s1 + $0x10] sm:$0xff]  }
   0x4   :  { %v2090_v3 = vld [vmem:[%s2877_s1 + $0x80] sm:$0xff]   ;;  %1767 = vmatpush3.bf16.msra.mxu0 %v2089_v2  ;;  %v2094_v7 = vld [vmem:[%s2877_s1 + $0x88] sm:$0xff]   ;;  %v2098_v11 = vld [vmem:[%s2877_s1 + $0x90] sm:$0xff]  }
   0x5   :  { %1831 = vmatpush3.bf16.msra.mxu1 %v2090_v3  ;;  %1768 = vmatprep.subr.bf16.mxu0 %v2091_v4  ;;  %v2099_v12 = vld [vmem:[%s2877_s1 + $0x58] sm:$0xff]   ;;  %v2103_v16 = vld [vmem:[%s2877_s1 + $0x60] sm:$0xff]   ;;  %v2107_v20 = vld [vmem:[%s2877_s1 + $0x68] sm:$0xff]  }
   0x6   :  { %1832 = vmatprep.subr.bf16.mxu1 %v2092_v5  ;;  %v2100_v13 = vld [vmem:[%s2877_s1 + $0xd8] sm:$0xff]   ;;  %v2104_v17 = vld [vmem:[%s2877_s1 + $0xe0] sm:$0xff]   ;;  %v2108_v21 = vld [vmem:[%s2877_s1 + $0xe8] sm:$0xff]  }
   0x7   :  { %v2101_v14 = vld [vmem:[%s2877_s1 + $0x18] sm:$0xff]   ;;  %v2105_v18 = vld [vmem:[%s2877_s1 + $0x20] sm:$0xff]   ;;  %v2109_v22 = vld [vmem:[%s2877_s1 + $0x28] sm:$0xff]  }
   0x8   :  { %1769 = vmatpush3.bf16.msra.mxu0 %v2093_v6  ;;  %v2102_v15 = vld [vmem:[%s2877_s1 + $0x98] sm:$0xff]   ;;  %v2106_v19 = vld [vmem:[%s2877_s1 + $0xa0] sm:$0xff]   ;;  %v2110_v23 = vld [vmem:[%s2877_s1 + $0xa8] sm:$0xff]  }
   0x9   :  { %1833 = vmatpush3.bf16.msra.mxu1 %v2094_v7  ;;  %1770 = vmatprep.subr.bf16.mxu0 %v2095_v8  ;;  %v2111_v24 = vld [vmem:[%s2877_s1 + $0x70] sm:$0xff]   ;;  %v2115_v28 = vld [vmem:[%s2877_s1 + $0x78] sm:$0xff]   ;;  %v2119_v32 = vld [vmem:[%s2878_s0] ss:$36 sps:$4 sm:$0xff]  }
   0xa   :  { %1834 = vmatprep.subr.bf16.mxu1 %v2096_v9  ;;  %v2112_v25 = vld [vmem:[%s2877_s1 + $0xf0] sm:$0xff]   ;;  %v2116_v29 = vld [vmem:[%s2877_s1 + $0xf8] sm:$0xff]   ;;  %v2121_v33 = vld [vmem:[%s2878_s0 + $0x4] ss:$36 sps:$4 sm:$0xff]  }
   0xb   :  { %v2113_v26 = vld [vmem:[%s2877_s1 + $0x30] sm:$0xff]   ;;  %v2117_v30 = vld [vmem:[%s2877_s1 + $0x38] sm:$0xff]   ;;  %v2122_v34 = vld [vmem:[%s2878_s0 + $0x8] ss:$36 sps:$4 sm:$0xff]   ;;  %1077 = vmatprep.mubr.bf16.mxu0 %v2121_v33 }
   0xc   :  { %1771 = vmatpush3.bf16.msra.mxu0 %v2097_v10  ;;  %v2114_v27 = vld [vmem:[%s2877_s1 + $0xb0] sm:$0xff]   ;;  %v2118_v31 = vld [vmem:[%s2877_s1 + $0xb8] sm:$0xff]   ;;  %v2125_v36 = vld [vmem:[%s2877_s1 + $0x140] sm:$0xff]  }
   0xd   :  { %1835 = vmatpush3.bf16.msra.mxu1 %v2098_v11  ;;  %1772 = vmatprep.subr.bf16.mxu0 %v2099_v12  ;;  %v2124_v35 = vld [vmem:[%s2878_s0 + $0xc] ss:$36 sps:$4 sm:$0xff]   ;;  %v2126_v37 = vld [vmem:[%s2877_s1 + $0x100] sm:$0xff]   ;;  %v2129_v39 = vld [vmem:[%s2878_s0 + $0x54] ss:$36 sps:$4 sm:$0xff]  }
   0xe   :  { %1836 = vmatprep.subr.bf16.mxu1 %v2100_v13  ;;  %1174 = vmatprep.mubr.bf16.mxu1 %v2124_v35  ;;  %v2127_v38 = vld [vmem:[%s2878_s0 + $0x4c] ss:$36 sps:$4 sm:$0xff]   ;;  %v2135_v44 = vld [vmem:[%s2878_s0 + $0x94] ss:$36 sps:$4 sm:$0xff]   ;;  %v2137_v45 = vld [vmem:[%s2878_s0 + $0x9c] ss:$36 sps:$4 sm:$0xff]  }
   0xf   :  { %v2131_v40 = vld [vmem:[%s2878_s0 + $0x48] ss:$36 sps:$4 sm:$0xff]   ;;  %v2132_v41 = vld [vmem:[%s2878_s0 + $0x50] ss:$36 sps:$4 sm:$0xff]   ;;  %v2142_v47 = vld [vmem:[%s2877_s1 + $0x1c0] sm:$0xff]  }
  0x10   :  { %1773 = vmatpush3.bf16.msra.mxu0 %v2101_v14  ;;  %v2133_v42 = vld [vmem:[%s2877_s1 + $0x148] sm:$0xff]   ;;  %v2141_v46 = vld [vmem:[%s2877_s1 + $0x150] sm:$0xff]   ;;  %v2144_v50 = vld [vmem:[%s2877_s1 + $0x180] sm:$0xff]  }
  0x11   :  { %1837 = vmatpush3.bf16.msra.mxu1 %v2102_v15  ;;  %1774 = vmatprep.subr.bf16.mxu0 %v2103_v16  ;;  %v2134_v43 = vld [vmem:[%s2877_s1 + $0x108] sm:$0xff]   ;;  %v2139_v48 = vld [vmem:[%s2878_s0 + $0x90] ss:$36 sps:$4 sm:$0xff]   ;;  %v2140_v51 = vld [vmem:[%s2878_s0 + $0x98] ss:$36 sps:$4 sm:$0xff]  }
  0x12   :  { %1838 = vmatprep.subr.bf16.mxu1 %v2104_v17  ;;  %v2143_v49 = vld [vmem:[%s2877_s1 + $0x110] sm:$0xff]   ;;  %v2145_v52 = vld [vmem:[%s2878_s0 + $0xdc] ss:$36 sps:$4 sm:$0xff]   ;;  %v2147_v53 = vld [vmem:[%s2878_s0 + $0xe4] ss:$36 sps:$4 sm:$0xff]  }
  0x13   :  { %v2151_v54 = vld [vmem:[%s2877_s1 + $0x158] sm:$0xff]   ;;  %v2152_v55 = vld [vmem:[%s2877_s1 + $0x1c8] sm:$0xff]   ;;  %v2150_v59 = vld [vmem:[%s2878_s0 + $0xe0] ss:$36 sps:$4 sm:$0xff]  }
  0x14   :  { %1775 = vmatpush3.bf16.msra.mxu0 %v2105_v18  ;;  %v2153_v56 = vld [vmem:[%s2877_s1 + $0x118] sm:$0xff]   ;;  %v2154_v57 = vld [vmem:[%s2877_s1 + $0x188] sm:$0xff]   ;;  %v2161_v62 = vld [vmem:[%s2877_s1 + $0x160] sm:$0xff]  }
  0x15   :  { %1839 = vmatpush3.bf16.msra.mxu1 %v2106_v19  ;;  %1776 = vmatprep.subr.bf16.mxu0 %v2107_v20  ;;  %v2149_v58 = vld [vmem:[%s2878_s0 + $0xd8] ss:$36 sps:$4 sm:$0xff]   ;;  %v2155_v60 = vld [vmem:[%s2878_s0 + $0x124] ss:$36 sps:$4 sm:$0xff]   ;;  %v2157_v61 = vld [vmem:[%s2878_s0 + $0x12c] ss:$36 sps:$4 sm:$0xff]  }
  0x16   :  { %1840 = vmatprep.subr.bf16.mxu1 %v2108_v21  ;;  %v2162_v63 = vld [vmem:[%s2877_s1 + $0x1d0] sm:$0xff]   ;;  %v2163_v0 = vld [vmem:[%s2877_s1 + $0x120] sm:$0xff]   ;;  %v2160_v3 = vld [vmem:[%s2878_s0 + $0x128] ss:$36 sps:$4 sm:$0xff]  }
  0x17   :  { %v2164_v1 = vld [vmem:[%s2877_s1 + $0x190] sm:$0xff]   ;;  %v2159_v2 = vld [vmem:[%s2878_s0 + $0x120] ss:$36 sps:$4 sm:$0xff]   ;;  %v2171_v6 = vld [vmem:[%s2877_s1 + $0x168] sm:$0xff]  }
  0x18   :  { %1777 = vmatpush3.bf16.msra.mxu0 %v2109_v22  ;;  %v2165_v4 = vld [vmem:[%s2878_s0 + $0x16c] ss:$36 sps:$4 sm:$0xff]   ;;  %v2167_v5 = vld [vmem:[%s2878_s0 + $0x174] ss:$36 sps:$4 sm:$0xff]   ;;  %v2177_v14 = vld [vmem:[%s2878_s0 + $0x1bc] ss:$36 sps:$4 sm:$0xff]  }
  0x19   :  { %1841 = vmatpush3.bf16.msra.mxu1 %v2110_v23  ;;  %1778 = vmatprep.subr.bf16.mxu0 %v2111_v24  ;;  %v2172_v7 = vld [vmem:[%s2877_s1 + $0x1d8] sm:$0xff]   ;;  %v2173_v8 = vld [vmem:[%s2877_s1 + $0x128] sm:$0xff]   ;;  %v2170_v11 = vld [vmem:[%s2878_s0 + $0x170] ss:$36 sps:$4 sm:$0xff]  }
  0x1a   :  { %1842 = vmatprep.subr.bf16.mxu1 %v2112_v25  ;;  %v2174_v9 = vld [vmem:[%s2877_s1 + $0x198] sm:$0xff]   ;;  %v2169_v10 = vld [vmem:[%s2878_s0 + $0x168] ss:$36 sps:$4 sm:$0xff]   ;;  %v2181_v13 = vld [vmem:[%s2877_s1 + $0x170] sm:$0xff]  }
  0x1b   :  { %v2175_v12 = vld [vmem:[%s2878_s0 + $0x1b4] ss:$36 sps:$4 sm:$0xff]   ;;  %v2182_v15 = vld [vmem:[%s2877_s1 + $0x1e0] sm:$0xff]   ;;  %v2185_v18 = vld [vmem:[%s2877_s1 + $0x1e8] sm:$0xff]  }
  0x1c   :  { %1779 = vmatpush3.bf16.msra.mxu0 %v2113_v26  ;;  %v2183_v16 = vld [vmem:[%s2877_s1 + $0x130] sm:$0xff]   ;;  %v2184_v17 = vld [vmem:[%s2877_s1 + $0x1a0] sm:$0xff]   ;;  %v2186_v19 = vld [vmem:[%s2877_s1 + $0x1a8] sm:$0xff]  }
  0x1d   :  { %1843 = vmatpush3.bf16.msra.mxu1 %v2114_v27  ;;  %1780 = vmatprep.subr.bf16.mxu0 %v2115_v28  ;;  %v2179_v20 = vld [vmem:[%s2878_s0 + $0x1b0] ss:$36 sps:$4 sm:$0xff]   ;;  %v2180_v21 = vld [vmem:[%s2878_s0 + $0x1b8] ss:$36 sps:$4 sm:$0xff]   ;;  %v2189_v23 = vld [vmem:[%s2878_s0 + $0x204] ss:$36 sps:$4 sm:$0xff]  }
  0x1e   :  { %1844 = vmatprep.subr.bf16.mxu1 %v2116_v29  ;;  %v2187_v22 = vld [vmem:[%s2878_s0 + $0x1fc] ss:$36 sps:$4 sm:$0xff]   ;;  %v2194_v25 = vld [vmem:[%s2877_s1 + $0x1f0] sm:$0xff]  }
  0x1f   :  { %v2193_v24 = vld [vmem:[%s2877_s1 + $0x178] sm:$0xff]   ;;  %v2196_v27 = vld [vmem:[%s2877_s1 + $0x1b0] sm:$0xff]  }
  0x20   :  { %1781 = vmatpush3.bf16.msra.mxu0 %v2117_v30  ;;  %v2195_v26 = vld [vmem:[%s2877_s1 + $0x138] sm:$0xff]   ;;  %v2192_v30 = vld [vmem:[%s2878_s0 + $0x200] ss:$36 sps:$4 sm:$0xff]   ;;  %v2199_v35 = vld [vmem:[%s2878_s0 + $0x10] ss:$36 sps:$4 sm:$0xff]  }
  0x21   :  { %1845 = vmatpush3.bf16.msra.mxu1 %v2118_v31  ;;  %1894 = vmatprep.subr.bf16.mxu0 %v2125_v36  ;;  %v2197_v28 = vld [vmem:[%s2877_s1 + $0x1f8] sm:$0xff]  }
  0x22   :  { %1958 = vmatprep.subr.bf16.mxu1 %v2142_v47  ;;  %v2191_v29 = vld [vmem:[%s2878_s0 + $0x1f8] ss:$36 sps:$4 sm:$0xff]   ;;  %v2217_v47 = vld [vmem:[%s2878_s0 + $0xa0] ss:$36 sps:$4 sm:$0xff]  }
  0x23   :  { %1078 = vmatmul.mubr.bf16.vlgmr.msra.gmra.mrb[0].mxu0 %v2119_v32  ;;  %v2198_v31 = vld [vmem:[%s2877_s1 + $0x1b8] sm:$0xff]   ;;  %v2205_v32 = vld [vmem:[%s2877_s1 + $0x200] sm:$0xff]  }
  0x24   :  { %1175 = vmatmul.mubr.bf16.vlgmr.msra.gmra.mrb[0].mxu1 %v2122_v34  ;;  %1895 = vmatpush3.bf16.msra.mxu0 %v2126_v37  ;;  %v2201_v33 = vld [vmem:[%s2878_s0 + $0x14] ss:$36 sps:$4 sm:$0xff]   ;;  %v2204_v34 = vld [vmem:[%s2878_s0 + $0x1c] ss:$36 sps:$4 sm:$0xff]  }
  0x25   :  { %1085 = vmatprep.mubr.bf16.mxu0 %v2127_v38  ;;  %1182 = vmatprep.mubr.bf16.mxu1 %v2129_v39  ;;  %v2202_v36 = vld [vmem:[%s2878_s0 + $0x18] ss:$36 sps:$4 sm:$0xff]   ;;  %v2208_v38 = vld [vmem:[%s2878_s0 + $0x64] ss:$36 sps:$4 sm:$0xff]  }
  0x26   :  { %1896 = vmatprep.subr.bf16.mxu0 %v2133_v42  ;;  %1959 = vmatpush3.bf16.msra.mxu1 %v2144_v50  ;;  %v2206_v37 = vld [vmem:[%s2878_s0 + $0x5c] ss:$36 sps:$4 sm:$0xff]   ;;  %v2212_v39 = vld [vmem:[%s2877_s1 + $0x208] sm:$0xff]   ;;  %v2222_v50 = vld [vmem:[%s2878_s0 + $0xf4] ss:$36 sps:$4 sm:$0xff]  }
  0x27   :  { %1960 = vmatprep.subr.bf16.mxu1 %v2152_v55  ;;  %v2211_v42 = vld [vmem:[%s2878_s0 + $0x60] ss:$36 sps:$4 sm:$0xff]   ;;  %v2227_v55 = vld [vmem:[%s2878_s0 + $0x134] ss:$36 sps:$4 sm:$0xff]  }
  0x28   :  { %1897 = vmatpush3.bf16.msra.mxu0 %v2134_v43  ;;  %v2213_v43 = vld [vmem:[%s2878_s0 + $0xa4] ss:$36 sps:$4 sm:$0xff]  }
  0x29   :  { %1898 = vmatprep.subr.bf16.mxu0 %v2141_v46  ;;  %v2233_v46 = vld [vmem:[%s2877_s1 + $0x220] sm:$0xff]  }
  0x2a   :  { %1961 = vmatpush3.bf16.msra.mxu1 %v2154_v57  ;;  %v2254_v57 = vld [vmem:[%s2877_s1 + $0x238] sm:$0xff]  }
  0x2b   :  { %1086 = vmatmul.mubr.bf16.gmra.mrb[4].mxu0 %v2131_v40  ;;  %1962 = vmatprep.subr.bf16.mxu1 %v2162_v63  ;;  %v2219_v40 = vld [vmem:[%s2877_s1 + $0x210] sm:$0xff]   ;;  %v2239_v63 = vld [vmem:[%s2878_s0 + $0x180] ss:$36 sps:$4 sm:$0xff]  }
  0x2c   :  { %1183 = vmatmul.mubr.bf16.gmra.mrb[4].mxu1 %v2132_v41  ;;  %1093 = vmatprep.mubr.bf16.mxu0 %v2135_v44  ;;  %v2210_v41 = vld [vmem:[%s2878_s0 + $0x58] ss:$36 sps:$4 sm:$0xff]   ;;  %v2215_v44 = vld [vmem:[%s2878_s0 + $0xac] ss:$36 sps:$4 sm:$0xff]  }
  0x2d   :  { %1190 = vmatprep.mubr.bf16.mxu1 %v2137_v45  ;;  %1899 = vmatpush3.bf16.msra.mxu0 %v2143_v49  ;;  %v2226_v45 = vld [vmem:[%s2877_s1 + $0x218] sm:$0xff]   ;;  %v2220_v49 = vld [vmem:[%s2878_s0 + $0xec] ss:$36 sps:$4 sm:$0xff]  }
  0x2e   :  { %1900 = vmatprep.subr.bf16.mxu0 %v2151_v54  ;;  %1963 = vmatpush3.bf16.msra.mxu1 %v2164_v1  ;;  %v2225_v54 = vld [vmem:[%s2878_s0 + $0xf0] ss:$36 sps:$4 sm:$0xff]  }
  0x2f   :  { %1964 = vmatprep.subr.bf16.mxu1 %v2172_v7  ;;  %v2243_v1 = vld [vmem:[%s2878_s0 + $0x1cc] ss:$36 sps:$4 sm:$0xff]  }
  0x30   :  { %v2253_v7 = vld [vmem:[%s2878_s0 + $0x210] ss:$36 sps:$4 sm:$0xff]  }
  0x31   :  { %1901 = vmatpush3.bf16.msra.mxu0 %v2153_v56  ;;  %v2229_v56 = vld [vmem:[%s2878_s0 + $0x13c] ss:$36 sps:$4 sm:$0xff]  }
  0x32   :  { %1902 = vmatprep.subr.bf16.mxu0 %v2161_v62  ;;  %1965 = vmatpush3.bf16.msra.mxu1 %v2174_v9  ;;  %v2238_v62 = vld [vmem:[%s2878_s0 + $0x178] ss:$36 sps:$4 sm:$0xff]   ;;  %v2256_v9 = vld [vmem:[%s2878_s0 + $0x140] ss:$36 sps:$4 sm:$0xff]  }
  0x33   :  { %1094 = vmatmul.mubr.bf16.gmra.mrb[8].mxu0 %v2139_v48  ;;  %1966 = vmatprep.subr.bf16.mxu1 %v2182_v15  ;;  %v2218_v48 = vld [vmem:[%s2878_s0 + $0xa8] ss:$36 sps:$4 sm:$0xff]   ;;  %v2262_v15 = vld [vmem:[%s2878_s0 + $0x218] ss:$36 sps:$4 sm:$0xff]  }
  0x34   :  { %1191 = vmatmul.mubr.bf16.gmra.mrb[8].mxu1 %v2140_v51  ;;  %1101 = vmatprep.mubr.bf16.mxu0 %v2145_v52  ;;  %v2240_v51 = vld [vmem:[%s2877_s1 + $0x228] sm:$0xff]  }
  0x35   :  { %1198 = vmatprep.mubr.bf16.mxu1 %v2147_v53  ;;  %1903 = vmatpush3.bf16.msra.mxu0 %v2163_v0  ;;  %v2224_v52 = vld [vmem:[%s2878_s0 + $0xe8] ss:$36 sps:$4 sm:$0xff]   ;;  %v2247_v53 = vld [vmem:[%s2877_s1 + $0x230] sm:$0xff]  }
  0x36   :  { %1904 = vmatprep.subr.bf16.mxu0 %v2171_v6  ;;  %1967 = vmatpush3.bf16.msra.mxu1 %v2184_v17  ;;  %v2241_v0 = vld [vmem:[%s2878_s0 + $0x1c4] ss:$36 sps:$4 sm:$0xff]  }
  0x37   :  { %1968 = vmatprep.subr.bf16.mxu1 %v2185_v18  ;;  %v2252_v6 = vld [vmem:[%s2878_s0 + $0x208] ss:$36 sps:$4 sm:$0xff]  }
  0x39   :  { %1905 = vmatpush3.bf16.msra.mxu0 %v2173_v8  ;;  %v2255_v8 = vld [vmem:[%s2878_s0 + $0x20] ss:$36 sps:$4 sm:$0xff]  }
  0x3a   :  { %1906 = vmatprep.subr.bf16.mxu0 %v2181_v13  ;;  %1969 = vmatpush3.bf16.msra.mxu1 %v2186_v19  ;;  %v2260_v13 = vld [vmem:[%s2878_s0 + $0x1d0] ss:$36 sps:$4 sm:$0xff]  }
  0x3b   :  { %1102 = vmatmul.mubr.bf16.gmra.mrb[12].mxu0 %v2149_v58  ;;  %1970 = vmatprep.subr.bf16.mxu1 %v2194_v25  ;;  %v2231_v58 = vld [vmem:[%s2878_s0 + $0x130] ss:$36 sps:$4 sm:$0xff]  }
  0x3c   :  { %1199 = vmatmul.mubr.bf16.gmra.mrb[12].mxu1 %v2150_v59  ;;  %1109 = vmatprep.mubr.bf16.mxu0 %v2155_v60  ;;  %v2232_v59 = vld [vmem:[%s2878_s0 + $0x138] ss:$36 sps:$4 sm:$0xff]  }
  0x3d   :  { %1206 = vmatprep.mubr.bf16.mxu1 %v2157_v61  ;;  %1907 = vmatpush3.bf16.msra.mxu0 %v2183_v16  ;;  %v2234_v60 = vld [vmem:[%s2878_s0 + $0x17c] ss:$36 sps:$4 sm:$0xff]   ;;  %v2236_v61 = vld [vmem:[%s2878_s0 + $0x184] ss:$36 sps:$4 sm:$0xff]  }
  0x3e   :  { %1908 = vmatprep.subr.bf16.mxu0 %v2193_v24  ;;  %1971 = vmatpush3.bf16.msra.mxu1 %v2196_v27 }
  0x3f   :  { %1972 = vmatprep.subr.bf16.mxu1 %v2197_v28 }
  0x41   :  { %1909 = vmatpush3.bf16.msra.mxu0 %v2195_v26 }
  0x42   :  { %2038 = vmatprep.subr.bf16.mxu0 %v2205_v32  ;;  %1973 = vmatpush3.bf16.msra.mxu1 %v2198_v31 }
  0x43   :  { %1110 = vmatmul.mubr.bf16.gmra.mrb[16].mxu0 %v2159_v2  ;;  %2070 = vmatprep.subr.bf16.mxu1 %v2205_v32  ;;  %v2245_v2 = vld [vmem:[%s2878_s0 + $0x1c0] ss:$36 sps:$4 sm:$0xff]  }
  0x44   :  { %1207 = vmatmul.mubr.bf16.gmra.mrb[16].mxu1 %v2160_v3  ;;  %1117 = vmatprep.mubr.bf16.mxu0 %v2165_v4  ;;  %v2246_v3 = vld [vmem:[%s2878_s0 + $0x1c8] ss:$36 sps:$4 sm:$0xff]  }
  0x45   :  { %1214 = vmatprep.mubr.bf16.mxu1 %v2167_v5  ;;  %v2248_v4 = vld [vmem:[%s2878_s0 + $0x20c] ss:$36 sps:$4 sm:$0xff]   ;;  %v2250_v5 = vld [vmem:[%s2878_s0 + $0x214] ss:$36 sps:$4 sm:$0xff]  }
  0x4b   :  { %1118 = vmatmul.mubr.bf16.gmra.mrb[20].mxu0 %v2169_v10  ;;  %v2257_v10 = vld [vmem:[%s2878_s0 + $0x68] ss:$36 sps:$4 sm:$0xff]  }
  0x4c   :  { %1215 = vmatmul.mubr.bf16.gmra.mrb[20].mxu1 %v2170_v11  ;;  %1125 = vmatprep.mubr.bf16.mxu0 %v2175_v12  ;;  %v2258_v11 = vld [vmem:[%s2878_s0 + $0x188] ss:$36 sps:$4 sm:$0xff]   ;;  %v2259_v12 = vld [vmem:[%s2878_s0 + $0xb0] ss:$36 sps:$4 sm:$0xff]  }
  0x4d   :  { %1222 = vmatprep.mubr.bf16.mxu1 %v2177_v14  ;;  %v2261_v14 = vld [vmem:[%s2878_s0 + $0xf8] ss:$36 sps:$4 sm:$0xff]  }
  0x53   :  { %1126 = vmatmul.mubr.bf16.gmra.mrb[24].mxu0 %v2179_v20 }
  0x54   :  { %1223 = vmatmul.mubr.bf16.gmra.mrb[24].mxu1 %v2180_v21  ;;  %1133 = vmatprep.mubr.bf16.mxu0 %v2187_v22 }
  0x55   :  { %1230 = vmatprep.mubr.bf16.mxu1 %v2189_v23 }
  0x5b   :  { %1134 = vmatmul.mubr.bf16.gmra.mrb[28].mxu0 %v2191_v29 }
  0x5c   :  { %1231 = vmatmul.mubr.bf16.gmra.mrb[28].mxu1 %v2192_v30  ;;  %1271 = vmatprep.mubr.bf16.mxu0 %v2201_v33 }
  0x5d   :  { %1368 = vmatprep.mubr.bf16.mxu1 %v2204_v34 }
  0x63   :  { %1272 = vmatmul.mubr.bf16.vlgmr.msra.gmra.mrb[32].mxu0 %v2199_v35 }
  0x64   :  { %1369 = vmatmul.mubr.bf16.vlgmr.msra.gmra.mrb[32].mxu1 %v2202_v36  ;;  %2039 = vmatpush3.bf16.msra.mxu0 %v2205_v32 }
  0x65   :  { %1279 = vmatprep.mubr.bf16.mxu0 %v2206_v37  ;;  %1376 = vmatprep.mubr.bf16.mxu1 %v2208_v38 }
  0x66   :  { %2040 = vmatprep.subr.bf16.mxu0 %v2212_v39  ;;  %2078 = vmatpush3.bf16.msra.mxu1 %v2205_v32 }
  0x67   :  { %2071 = vmatprep.subr.bf16.mxu1 %v2212_v39 }
  0x68   :  { %2041 = vmatpush3.bf16.msra.mxu0 %v2212_v39 }
  0x69   :  { %2042 = vmatprep.subr.bf16.mxu0 %v2219_v40 }
  0x6a   :  { %2079 = vmatpush3.bf16.msra.mxu1 %v2212_v39 }
  0x6b   :  { %1280 = vmatmul.mubr.bf16.gmra.mrb[36].mxu0 %v2210_v41  ;;  %2072 = vmatprep.subr.bf16.mxu1 %v2219_v40 }
  0x6c   :  { %1377 = vmatmul.mubr.bf16.gmra.mrb[36].mxu1 %v2211_v42  ;;  %1287 = vmatprep.mubr.bf16.mxu0 %v2213_v43 }
  0x6d   :  { %1384 = vmatprep.mubr.bf16.mxu1 %v2215_v44  ;;  %2043 = vmatpush3.bf16.msra.mxu0 %v2219_v40 }
  0x6e   :  { %2044 = vmatprep.subr.bf16.mxu0 %v2226_v45  ;;  %2080 = vmatpush3.bf16.msra.mxu1 %v2219_v40 }
  0x6f   :  { %2073 = vmatprep.subr.bf16.mxu1 %v2226_v45 }
  0x71   :  { %2045 = vmatpush3.bf16.msra.mxu0 %v2226_v45 }
  0x72   :  { %2046 = vmatprep.subr.bf16.mxu0 %v2233_v46  ;;  %2081 = vmatpush3.bf16.msra.mxu1 %v2226_v45 }
  0x73   :  { %1288 = vmatmul.mubr.bf16.gmra.mrb[40].mxu0 %v2217_v47  ;;  %2074 = vmatprep.subr.bf16.mxu1 %v2233_v46 }
  0x74   :  { %1385 = vmatmul.mubr.bf16.gmra.mrb[40].mxu1 %v2218_v48  ;;  %1295 = vmatprep.mubr.bf16.mxu0 %v2220_v49 }
  0x75   :  { %1392 = vmatprep.mubr.bf16.mxu1 %v2222_v50  ;;  %2047 = vmatpush3.bf16.msra.mxu0 %v2233_v46 }
  0x76   :  { %2048 = vmatprep.subr.bf16.mxu0 %v2240_v51  ;;  %2082 = vmatpush3.bf16.msra.mxu1 %v2233_v46 }
  0x77   :  { %2075 = vmatprep.subr.bf16.mxu1 %v2240_v51 }
  0x79   :  { %2049 = vmatpush3.bf16.msra.mxu0 %v2240_v51 }
  0x7a   :  { %2050 = vmatprep.subr.bf16.mxu0 %v2247_v53  ;;  %2083 = vmatpush3.bf16.msra.mxu1 %v2240_v51 }
  0x7b   :  { %1296 = vmatmul.mubr.bf16.gmra.mrb[44].mxu0 %v2224_v52  ;;  %2076 = vmatprep.subr.bf16.mxu1 %v2247_v53 }
  0x7c   :  { %1393 = vmatmul.mubr.bf16.gmra.mrb[44].mxu1 %v2225_v54  ;;  %1303 = vmatprep.mubr.bf16.mxu0 %v2227_v55 }
  0x7d   :  { %1400 = vmatprep.mubr.bf16.mxu1 %v2229_v56  ;;  %2051 = vmatpush3.bf16.msra.mxu0 %v2247_v53 }
  0x7e   :  { %2052 = vmatprep.subr.bf16.mxu0 %v2254_v57  ;;  %2084 = vmatpush3.bf16.msra.mxu1 %v2247_v53 }
  0x7f   :  { %2077 = vmatprep.subr.bf16.mxu1 %v2254_v57 }
  0x81   :  { %2053 = vmatpush3.bf16.msra.mxu0 %v2254_v57 }
  0x82   :  { %2085 = vmatpush3.bf16.msra.mxu1 %v2254_v57 }
  0x83   :  { %1304 = vmatmul.mubr.bf16.gmra.mrb[48].mxu0 %v2231_v58 }
  0x84   :  { %1401 = vmatmul.mubr.bf16.gmra.mrb[48].mxu1 %v2232_v59  ;;  %1311 = vmatprep.mubr.bf16.mxu0 %v2234_v60  ;;  %v2263_v59 = vmov 0.0  }
  0x85   :  { %1408 = vmatprep.mubr.bf16.mxu1 %v2236_v61  ;;  %19 = vst [vmem:[%s2879_s3] sm:$0x1] %v2263_v59  ;;  %20 = vst [vmem:[%s2880_s4] sm:$0x1] %v2263_v59 }
  0x8b   :  { %1312 = vmatmul.mubr.bf16.gmra.mrb[52].mxu0 %v2238_v62 }
  0x8c   :  { %1409 = vmatmul.mubr.bf16.gmra.mrb[52].mxu1 %v2239_v63  ;;  %1319 = vmatprep.mubr.bf16.mxu0 %v2241_v0 }
  0x8d   :  { %1416 = vmatprep.mubr.bf16.mxu1 %v2243_v1 }
  0x93   :  { %1320 = vmatmul.mubr.bf16.gmra.mrb[56].mxu0 %v2245_v2 }
  0x94   :  { %1417 = vmatmul.mubr.bf16.gmra.mrb[56].mxu1 %v2246_v3  ;;  %1327 = vmatprep.mubr.bf16.mxu0 %v2248_v4 }
  0x95   :  { %1424 = vmatprep.mubr.bf16.mxu1 %v2250_v5 }
  0x9b   :  { %1328 = vmatmul.mubr.bf16.gmra.mrb[60].mxu0 %v2252_v6 }
  0x9c   :  { %1425 = vmatmul.mubr.bf16.gmra.mrb[60].mxu1 %v2253_v7  ;;  %2054 = vmatprep.mubr.bf16.mxu0 %v2255_v8 }
  0x9d   :  { %2062 = vmatprep.mubr.bf16.mxu1 %v2256_v9 }
  0xa3   :  { %2055 = vmatmul.mubr.bf16.vlgmr.msra.gmra.mrb[64].mxu0 %v2257_v10 }
  0xa4   :  { %2063 = vmatmul.mubr.bf16.vlgmr.msra.gmra.mrb[64].mxu1 %v2258_v11  ;;  %2058 = vmatprep.mubr.bf16.mxu0 %v2259_v12 }
  0xa5   :  { %2066 = vmatprep.mubr.bf16.mxu1 %v2260_v13 }
  0xab   :  { %2059 = vmatmul.mubr.bf16.gmra.mrb[68].mxu0 %v2261_v14 }
  0xac   :  { %2067 = vmatmul.mubr.bf16.gmra.mrb[68].mxu1 %v2262_v15 }
  0xf6   :  { %v1782_v16 = vpop.f32.mrb[0].mxu0 }
  0xf7   :  { %v1846_v17 = vpop.f32.mrb[0].mxu1  ;;  %v1783_v18 = vpop.f32.mrb[1].mxu0 }
  0xf8   :  { %v1784_v19 = vadd.f32 %v1783_v18, %v1782_v16  ;;  %v1847_v20 = vpop.f32.mrb[1].mxu1  ;;  %v1785_v21 = vpop.f32.mrb[2].mxu0 }
  0xf9   :  { %v1848_v22 = vadd.f32 %v1847_v20, %v1846_v17  ;;  %v1849_v23 = vpop.f32.mrb[2].mxu1  ;;  %v1786_v24 = vpop.f32.mrb[3].mxu0 }
  0xfa   :  { %v1787_v25 = vadd.f32 %v1786_v24, %v1785_v21  ;;  %v1850_v26 = vpop.f32.mrb[3].mxu1 }
  0xfb   :  { %v2721_v27 = vadd.f32 %v1848_v22, %v1784_v19  ;;  %v1851_v28 = vadd.f32 %v1850_v26, %v1849_v23 }
  0xfd   :  { %v2723_v29 = vadd.f32 %v1851_v28, %v1787_v25 }
  0xfe   :  { %v1788_v30 = vpop.f32.mrb[4].mxu0 }
  0xff   :  { %v1852_v31 = vpop.f32.mrb[4].mxu1  ;;  %v1789_v32 = vpop.f32.mrb[5].mxu0 }
 0x100   :  { %v1790_v33 = vadd.f32 %v1789_v32, %v1788_v30  ;;  %v1853_v34 = vpop.f32.mrb[5].mxu1  ;;  %v1791_v35 = vpop.f32.mrb[6].mxu0 }
 0x101   :  { %v1854_v36 = vadd.f32 %v1853_v34, %v1852_v31  ;;  %v1855_v37 = vpop.f32.mrb[6].mxu1  ;;  %v1792_v38 = vpop.f32.mrb[7].mxu0 }
 0x102   :  { %v1793_v39 = vadd.f32 %v1792_v38, %v1791_v35  ;;  %v1856_v40 = vpop.f32.mrb[7].mxu1 }
 0x103   :  { %v2725_v41 = vadd.f32 %v1854_v36, %v1790_v33  ;;  %v1857_v42 = vadd.f32 %v1856_v40, %v1855_v37 }
 0x105   :  { %v2727_v43 = vadd.f32 %v1857_v42, %v1793_v39 }
 0x106   :  { %v1794_v44 = vpop.f32.mrb[8].mxu0 }
 0x107   :  { %v1858_v45 = vpop.f32.mrb[8].mxu1  ;;  %v1795_v46 = vpop.f32.mrb[9].mxu0 }
 0x108   :  { %v1796_v47 = vadd.f32 %v1795_v46, %v1794_v44  ;;  %v1859_v48 = vpop.f32.mrb[9].mxu1  ;;  %v1797_v49 = vpop.f32.mrb[10].mxu0 }
 0x109   :  { %v1860_v50 = vadd.f32 %v1859_v48, %v1858_v45  ;;  %v1861_v51 = vpop.f32.mrb[10].mxu1  ;;  %v1798_v52 = vpop.f32.mrb[11].mxu0 }
 0x10a   :  { %v1799_v53 = vadd.f32 %v1798_v52, %v1797_v49  ;;  %v1862_v54 = vpop.f32.mrb[11].mxu1 }
 0x10b   :  { %v2729_v55 = vadd.f32 %v1860_v50, %v1796_v47  ;;  %v1863_v56 = vadd.f32 %v1862_v54, %v1861_v51 }
 0x10d   :  { %v2731_v57 = vadd.f32 %v1863_v56, %v1799_v53 }
 0x10e   :  { %v1800_v58 = vpop.f32.mrb[12].mxu0 }
 0x10f   :  { %v1864_v60 = vpop.f32.mrb[12].mxu1  ;;  %v1801_v61 = vpop.f32.mrb[13].mxu0 }
 0x110   :  { %v1802_v62 = vadd.f32 %v1801_v61, %v1800_v58  ;;  %v1865_v63 = vpop.f32.mrb[13].mxu1  ;;  %v1803_v0 = vpop.f32.mrb[14].mxu0 }
 0x111   :  { %v1866_v1 = vadd.f32 %v1865_v63, %v1864_v60  ;;  %v1867_v2 = vpop.f32.mrb[14].mxu1  ;;  %v1804_v3 = vpop.f32.mrb[15].mxu0 }
 0x112   :  { %v1805_v4 = vadd.f32 %v1804_v3, %v1803_v0  ;;  %v1868_v5 = vpop.f32.mrb[15].mxu1 }
 0x113   :  { %v2739_v6 = vadd.f32 %v1866_v1, %v1802_v62  ;;  %v1869_v7 = vadd.f32 %v1868_v5, %v1867_v2 }
 0x115   :  { %v2741_v8 = vadd.f32 %v1869_v7, %v1805_v4 }
 0x116   :  { %v1806_v9 = vpop.f32.mrb[16].mxu0 }
 0x117   :  { %v1870_v10 = vpop.f32.mrb[16].mxu1  ;;  %v1807_v11 = vpop.f32.mrb[17].mxu0 }
 0x118   :  { %v1808_v12 = vadd.f32 %v1807_v11, %v1806_v9  ;;  %v1871_v13 = vpop.f32.mrb[17].mxu1  ;;  %v1809_v14 = vpop.f32.mrb[18].mxu0 }
 0x119   :  { %v1872_v15 = vadd.f32 %v1871_v13, %v1870_v10  ;;  %v1873_v16 = vpop.f32.mrb[18].mxu1  ;;  %v1810_v17 = vpop.f32.mrb[19].mxu0 }
 0x11a   :  { %v1811_v18 = vadd.f32 %v1810_v17, %v1809_v14  ;;  %v1874_v19 = vpop.f32.mrb[19].mxu1 }
 0x11b   :  { %v2743_v20 = vadd.f32 %v1872_v15, %v1808_v12  ;;  %v1875_v21 = vadd.f32 %v1874_v19, %v1873_v16 }
 0x11d   :  { %v2745_v22 = vadd.f32 %v1875_v21, %v1811_v18 }
 0x11e   :  { %v1812_v23 = vpop.f32.mrb[20].mxu0 }
 0x11f   :  { %v1876_v24 = vpop.f32.mrb[20].mxu1  ;;  %v1813_v25 = vpop.f32.mrb[21].mxu0 }
 0x120   :  { %v1814_v26 = vadd.f32 %v1813_v25, %v1812_v23  ;;  %v1877_v28 = vpop.f32.mrb[21].mxu1  ;;  %v1815_v30 = vpop.f32.mrb[22].mxu0 }
 0x121   :  { %v1878_v31 = vadd.f32 %v1877_v28, %v1876_v24  ;;  %v1879_v32 = vpop.f32.mrb[22].mxu1  ;;  %v1816_v33 = vpop.f32.mrb[23].mxu0 }
 0x122   :  { %v1817_v34 = vadd.f32 %v1816_v33, %v1815_v30  ;;  %v1880_v35 = vpop.f32.mrb[23].mxu1 }
 0x123   :  { %v2747_v36 = vadd.f32 %v1878_v31, %v1814_v26  ;;  %v1881_v37 = vadd.f32 %v1880_v35, %v1879_v32 }
 0x125   :  { %v2749_v38 = vadd.f32 %v1881_v37, %v1817_v34 }
 0x126   :  { %v1818_v39 = vpop.f32.mrb[24].mxu0 }
 0x127   :  { %v1882_v40 = vpop.f32.mrb[24].mxu1  ;;  %v1819_v42 = vpop.f32.mrb[25].mxu0 }
 0x128   :  { %v1820_v44 = vadd.f32 %v1819_v42, %v1818_v39  ;;  %v1883_v45 = vpop.f32.mrb[25].mxu1  ;;  %v1821_v46 = vpop.f32.mrb[26].mxu0 }
 0x129   :  { %v1884_v47 = vadd.f32 %v1883_v45, %v1882_v40  ;;  %v1885_v48 = vpop.f32.mrb[26].mxu1  ;;  %v1822_v49 = vpop.f32.mrb[27].mxu0 }
 0x12a   :  { %v1823_v50 = vadd.f32 %v1822_v49, %v1821_v46  ;;  %v1886_v51 = vpop.f32.mrb[27].mxu1 }
 0x12b   :  { %v2751_v52 = vadd.f32 %v1884_v47, %v1820_v44  ;;  %v1887_v53 = vadd.f32 %v1886_v51, %v1885_v48 }
 0x12d   :  { %v2753_v54 = vadd.f32 %v1887_v53, %v1823_v50 }
 0x12e   :  { %v1824_v56 = vpop.f32.mrb[28].mxu0 }
 0x12f   :  { %v1888_v58 = vpop.f32.mrb[28].mxu1  ;;  %v1825_v59 = vpop.f32.mrb[29].mxu0 }
 0x130   :  { %v1826_v60 = vadd.f32 %v1825_v59, %v1824_v56  ;;  %v1889_v61 = vpop.f32.mrb[29].mxu1  ;;  %v1827_v62 = vpop.f32.mrb[30].mxu0 }
 0x131   :  { %v1890_v63 = vadd.f32 %v1889_v61, %v1888_v58  ;;  %v1891_v0 = vpop.f32.mrb[30].mxu1  ;;  %v1828_v1 = vpop.f32.mrb[31].mxu0 }
 0x132   :  { %v1829_v2 = vadd.f32 %v1828_v1, %v1827_v62  ;;  %v1892_v3 = vpop.f32.mrb[31].mxu1 }
 0x133   :  { %v2755_v4 = vadd.f32 %v1890_v63, %v1826_v60  ;;  %v1893_v5 = vadd.f32 %v1892_v3, %v1891_v0 }
 0x135   :  { %v2757_v7 = vadd.f32 %v1893_v5, %v1829_v2 }
 0x136   :  { %v1910_v9 = vpop.f32.mrb[32].mxu0 }
 0x137   :  { %v1911_v10 = vpop.f32.mrb[33].mxu0  ;;  %v1974_v11 = vpop.f32.mrb[32].mxu1 }
 0x138   :  { %v1912_v12 = vadd.f32 %v1911_v10, %v1910_v9  ;;  %v1913_v13 = vpop.f32.mrb[34].mxu0  ;;  %v1975_v14 = vpop.f32.mrb[33].mxu1 }
 0x139   :  { %v1914_v15 = vpop.f32.mrb[35].mxu0  ;;  %v1976_v16 = vadd.f32 %v1975_v14, %v1974_v11  ;;  %v1977_v17 = vpop.f32.mrb[34].mxu1 }
 0x13a   :  { %v1274_v18 = vadd.f32 %v1912_v12, %v2721_v27  ;;  %v1915_v19 = vadd.f32 %v1914_v15, %v1913_v13  ;;  %v1978_v21 = vpop.f32.mrb[35].mxu1 }
 0x13b   :  { %v1979_v23 = vadd.f32 %v1978_v21, %v1977_v17 }
 0x13c   :  { %v1277_v24 = vadd.f32 %v1915_v19, %v2723_v29  ;;  %v2761_v25 = vadd.f32 %v1976_v16, %v1274_v18 }
 0x13e   :  { %v1916_v26 = vpop.f32.mrb[36].mxu0  ;;  %v2763_v28 = vadd.f32 %v1979_v23, %v1277_v24 }
 0x13f   :  { %v1917_v30 = vpop.f32.mrb[37].mxu0  ;;  %v1980_v31 = vpop.f32.mrb[36].mxu1 }
 0x140   :  { %v1918_v32 = vadd.f32 %v1917_v30, %v1916_v26  ;;  %v1919_v33 = vpop.f32.mrb[38].mxu0  ;;  %v1981_v34 = vpop.f32.mrb[37].mxu1 }
 0x141   :  { %v1920_v35 = vpop.f32.mrb[39].mxu0  ;;  %v1982_v37 = vadd.f32 %v1981_v34, %v1980_v31  ;;  %v1983_v39 = vpop.f32.mrb[38].mxu1 }
 0x142   :  { %v1282_v27 = vadd.f32 %v1918_v32, %v2725_v41  ;;  %v1921_v40 = vadd.f32 %v1920_v35, %v1919_v33  ;;  %v1984_v42 = vpop.f32.mrb[39].mxu1 }
 0x143   :  { %v1985_v44 = vadd.f32 %v1984_v42, %v1983_v39 }
 0x144   :  { %v1285_v29 = vadd.f32 %v1921_v40, %v2727_v43  ;;  %v2767_v45 = vadd.f32 %v1982_v37, %v1282_v27 }
 0x146   :  { %v1922_v46 = vpop.f32.mrb[40].mxu0  ;;  %v2769_v47 = vadd.f32 %v1985_v44, %v1285_v29 }
 0x147   :  { %v1923_v48 = vpop.f32.mrb[41].mxu0  ;;  %v1986_v49 = vpop.f32.mrb[40].mxu1 }
 0x148   :  { %v1924_v50 = vadd.f32 %v1923_v48, %v1922_v46  ;;  %v1925_v51 = vpop.f32.mrb[42].mxu0  ;;  %v1987_v53 = vpop.f32.mrb[41].mxu1 }
 0x149   :  { %v1926_v56 = vpop.f32.mrb[43].mxu0  ;;  %v1988_v58 = vadd.f32 %v1987_v53, %v1986_v49  ;;  %v1989_v59 = vpop.f32.mrb[42].mxu1 }
 0x14a   :  { %v1290_v41 = vadd.f32 %v1924_v50, %v2729_v55  ;;  %v1927_v60 = vadd.f32 %v1926_v56, %v1925_v51  ;;  %v1990_v61 = vpop.f32.mrb[43].mxu1 }
 0x14b   :  { %v1991_v62 = vadd.f32 %v1990_v61, %v1989_v59 }
 0x14c   :  { %v1293_v43 = vadd.f32 %v1927_v60, %v2731_v57  ;;  %v2773_v63 = vadd.f32 %v1988_v58, %v1290_v41 }
 0x14e   :  { %v1928_v0 = vpop.f32.mrb[44].mxu0  ;;  %v2775_v1 = vadd.f32 %v1991_v62, %v1293_v43 }
 0x14f   :  { %v1929_v2 = vpop.f32.mrb[45].mxu0  ;;  %v1992_v3 = vpop.f32.mrb[44].mxu1 }
 0x150   :  { %v1930_v5 = vadd.f32 %v1929_v2, %v1928_v0  ;;  %v1931_v9 = vpop.f32.mrb[46].mxu0  ;;  %v1993_v10 = vpop.f32.mrb[45].mxu1 }
 0x151   :  { %v1932_v11 = vpop.f32.mrb[47].mxu0  ;;  %v1994_v12 = vadd.f32 %v1993_v10, %v1992_v3  ;;  %v1995_v13 = vpop.f32.mrb[46].mxu1 }
 0x152   :  { %v1298_v55 = vadd.f32 %v1930_v5, %v2739_v6  ;;  %v1933_v14 = vadd.f32 %v1932_v11, %v1931_v9  ;;  %v1996_v15 = vpop.f32.mrb[47].mxu1 }
 0x153   :  { %v1997_v16 = vadd.f32 %v1996_v15, %v1995_v13 }
 0x154   :  { %v1301_v57 = vadd.f32 %v1933_v14, %v2741_v8  ;;  %v2779_v17 = vadd.f32 %v1994_v12, %v1298_v55 }
 0x156   :  { %v1934_v18 = vpop.f32.mrb[48].mxu0  ;;  %v2781_v19 = vadd.f32 %v1997_v16, %v1301_v57 }
 0x157   :  { %v1935_v21 = vpop.f32.mrb[49].mxu0  ;;  %v1998_v23 = vpop.f32.mrb[48].mxu1 }
 0x158   :  { %v1936_v24 = vadd.f32 %v1935_v21, %v1934_v18  ;;  %v1937_v26 = vpop.f32.mrb[50].mxu0  ;;  %v1999_v30 = vpop.f32.mrb[49].mxu1 }
 0x159   :  { %v1938_v31 = vpop.f32.mrb[51].mxu0  ;;  %v2000_v32 = vadd.f32 %v1999_v30, %v1998_v23  ;;  %v2001_v33 = vpop.f32.mrb[50].mxu1 }
 0x15a   :  { %v1306_v6 = vadd.f32 %v1936_v24, %v2743_v20  ;;  %v1939_v34 = vadd.f32 %v1938_v31, %v1937_v26  ;;  %v2002_v35 = vpop.f32.mrb[51].mxu1 }
 0x15b   :  { %v2003_v37 = vadd.f32 %v2002_v35, %v2001_v33 }
 0x15c   :  { %v1309_v8 = vadd.f32 %v1939_v34, %v2745_v22  ;;  %v1403_v39 = vadd.f32 %v2000_v32, %v1306_v6 }
 0x15e   :  { %v1940_v27 = vpop.f32.mrb[52].mxu0  ;;  %v2785_v40 = vadd.f32 %v2003_v37, %v1309_v8 }
 0x15f   :  { %v1941_v42 = vpop.f32.mrb[53].mxu0  ;;  %v2004_v44 = vpop.f32.mrb[52].mxu1 }
 0x160   :  { %v1942_v29 = vadd.f32 %v1941_v42, %v1940_v27  ;;  %v1943_v46 = vpop.f32.mrb[54].mxu0  ;;  %v2005_v48 = vpop.f32.mrb[53].mxu1 }
 0x161   :  { %v1944_v49 = vpop.f32.mrb[55].mxu0  ;;  %v2006_v50 = vadd.f32 %v2005_v48, %v2004_v44  ;;  %v2007_v51 = vpop.f32.mrb[54].mxu1 }
 0x162   :  { %v1314_v53 = vadd.f32 %v1942_v29, %v2747_v36  ;;  %v1945_v20 = vadd.f32 %v1944_v49, %v1943_v46  ;;  %v2008_v56 = vpop.f32.mrb[55].mxu1 }
 0x163   :  { %v2009_v58 = vadd.f32 %v2008_v56, %v2007_v51 }
 0x164   :  { %v1317_v59 = vadd.f32 %v1945_v20, %v2749_v38  ;;  %v1411_v22 = vadd.f32 %v2006_v50, %v1314_v53 }
 0x166   :  { %v1946_v41 = vpop.f32.mrb[56].mxu0  ;;  %v1414_v60 = vadd.f32 %v2009_v58, %v1317_v59 }
 0x167   :  { %v1947_v61 = vpop.f32.mrb[57].mxu0  ;;  %v2010_v62 = vpop.f32.mrb[56].mxu1 }
 0x168   :  { %v1948_v43 = vadd.f32 %v1947_v61, %v1946_v41  ;;  %v1949_v0 = vpop.f32.mrb[58].mxu0  ;;  %v2011_v2 = vpop.f32.mrb[57].mxu1 }
 0x169   :  { %v1950_v3 = vpop.f32.mrb[59].mxu0  ;;  %v2012_v5 = vadd.f32 %v2011_v2, %v2010_v62  ;;  %v2013_v9 = vpop.f32.mrb[58].mxu1 }
 0x16a   :  { %v1322_v10 = vadd.f32 %v1948_v43, %v2751_v52  ;;  %v1951_v11 = vadd.f32 %v1950_v3, %v1949_v0  ;;  %v2014_v36 = vpop.f32.mrb[59].mxu1 }
 0x16b   :  { %v2015_v12 = vadd.f32 %v2014_v36, %v2013_v9 }
 0x16c   :  { %v1325_v13 = vadd.f32 %v1951_v11, %v2753_v54  ;;  %v1419_v55 = vadd.f32 %v2012_v5, %v1322_v10 }
 0x16e   :  { %v1952_v38 = vpop.f32.mrb[60].mxu0  ;;  %v2791_v14 = vadd.f32 %v2015_v12, %v1325_v13 }
 0x16f   :  { %v1953_v15 = vpop.f32.mrb[61].mxu0  ;;  %v2016_v16 = vpop.f32.mrb[60].mxu1 }
 0x170   :  { %v1954_v57 = vadd.f32 %v1953_v15, %v1952_v38  ;;  %v1955_v18 = vpop.f32.mrb[62].mxu0  ;;  %v2017_v21 = vpop.f32.mrb[61].mxu1 }
 0x171   :  { %v1956_v23 = vpop.f32.mrb[63].mxu0  ;;  %v2018_v24 = vadd.f32 %v2017_v21, %v2016_v16  ;;  %v2019_v26 = vpop.f32.mrb[62].mxu1 }
 0x172   :  { %v1330_v30 = vadd.f32 %v1954_v57, %v2755_v4  ;;  %v1957_v52 = vadd.f32 %v1956_v23, %v1955_v18  ;;  %v2020_v31 = vpop.f32.mrb[63].mxu1 }
 0x173   :  { %v2021_v32 = vadd.f32 %v2020_v31, %v2019_v26 }
 0x174   :  { %v1333_v33 = vadd.f32 %v1957_v52, %v2757_v7  ;;  %v1427_v54 = vadd.f32 %v2018_v24, %v1330_v30 }
 0x176   :  { %v2056_v6 = vpop.f32.mrb[64].mxu0  ;;  %v1430_v34 = vadd.f32 %v2021_v32, %v1333_v33 }
 0x177   :  { %v1476_v35 = vadd.f32 %v2056_v6, %v2767_v45  ;;  %v2064_v37 = vpop.f32.mrb[64].mxu1  ;;  %v1467_v8 = vpop.f32.mrb[65].mxu0 }
 0x178   :  { %v2796_v27 = vadd.f32 %v2064_v37, %v1411_v22  ;;  %v1468_v42 = vadd.f32 %v1467_v8, %v2761_v25  ;;  %v1499_v44 = vpop.f32.mrb[65].mxu1  ;;  %v2057_v29 = vpop.f32.mrb[66].mxu0 }
 0x179   :  { %1532 = vst [vmem:[%s2881_s2 + $0x10] sm:$0xff] %v1476_v35  ;;  %v1500_v4 = vadd.f32 %v1499_v44, %v1403_v39  ;;  %v1479_v7 = vadd.f32 %v2057_v29, %v2769_v47  ;;  %v2065_v46 = vpop.f32.mrb[66].mxu1  ;;  %v1470_v48 = vpop.f32.mrb[67].mxu0  ;;  %v1573_v51 = vmul.f32 %v1476_v35, %v1476_v35 }
 0x17a   :  { %1540 = vst [vmem:[%s2881_s2 + $0x50] sm:$0xff] %v2796_v27  ;;  %1530 = vst [vmem:[%s2881_s2] sm:$0xff] %v1468_v42  ;;  %v2810_v25 = vadd.f32 %v2065_v46, %v1414_v60  ;;  %v1471_v45 = vadd.f32 %v1470_v48, %v2763_v28  ;;  %v1502_v49 = vpop.f32.mrb[67].mxu1  ;;  %v1571_v39 = vmul.f32 %v1468_v42, %v1468_v42 }
 0x17b   :  { %1538 = vst [vmem:[%s2881_s2 + $0x40] sm:$0xff] %v1500_v4  ;;  %1533 = vst [vmem:[%s2881_s2 + $0x18] sm:$0xff] %v1479_v7  ;;  %v1503_v47 = vadd.f32 %v1502_v49, %v2785_v40  ;;  %v1574_v56 = vmul.f32 %v1479_v7, %v1479_v7  ;;  %v1579_v21 = vmul.f32 %v1500_v4, %v1500_v4 }
 0x17c   :  { %1541 = vst [vmem:[%s2881_s2 + $0x58] sm:$0xff] %v2810_v25  ;;  %1531 = vst [vmem:[%s2881_s2 + $0x8] sm:$0xff] %v1471_v45  ;;  %v1547_v28 = vadd.f32 %v1471_v45, %v1468_v42  ;;  %v1572_v50 = vmul.f32 %v1471_v45, %v1471_v45  ;;  %v1581_v31 = vmul.f32 %v2796_v27, %v2796_v27 }
 0x17d   :  { %1539 = vst [vmem:[%s2881_s2 + $0x48] sm:$0xff] %v1503_v47  ;;  %v1580_v26 = vmul.f32 %v1503_v47, %v1503_v47 }
 0x17e   :  { %v1548_v53 = vadd.f32 %v1547_v28, %v1476_v35  ;;  %v1587_v20 = vadd.f32 %v1572_v50, %v1571_v39  ;;  %v2060_v40 = vpop.f32.mrb[68].mxu0 }
 0x17f   :  { %v1492_v58 = vadd.f32 %v2060_v40, %v2779_v17  ;;  %v2068_v59 = vpop.f32.mrb[68].mxu1  ;;  %v1483_v22 = vpop.f32.mrb[69].mxu0 }
 0x180   :  { %v1588_v41 = vadd.f32 %v1587_v20, %v1573_v51  ;;  %v1524_v60 = vadd.f32 %v2068_v59, %v1427_v54  ;;  %v1484_v61 = vadd.f32 %v1483_v22, %v2773_v63  ;;  %v1549_v62 = vadd.f32 %v1548_v53, %v1479_v7  ;;  %v1515_v43 = vpop.f32.mrb[69].mxu1  ;;  %v2061_v0 = vpop.f32.mrb[70].mxu0  ;;  %v1570_v22 = vld [vmem:[%s2880_s4] sm:$0x1] }
 0x181   :  { %1536 = vst [vmem:[%s2881_s2 + $0x30] sm:$0xff] %v1492_v58  ;;  %v1516_v2 = vadd.f32 %v1515_v43, %v1419_v55  ;;  %v1495_v3 = vadd.f32 %v2061_v0, %v2781_v19  ;;  %v2069_v5 = vpop.f32.mrb[70].mxu1  ;;  %v1486_v9 = vpop.f32.mrb[71].mxu0  ;;  %v1577_v15 = vmul.f32 %v1492_v58, %v1492_v58  ;;  %v1582_v54 = vmul.f32 %v2810_v25, %v2810_v25 }
 0x182   :  { %1544 = vst [vmem:[%s2881_s2 + $0x70] sm:$0xff] %v1524_v60  ;;  %1534 = vst [vmem:[%s2881_s2 + $0x20] sm:$0xff] %v1484_v61  ;;  %v1550_v63 = vadd.f32 %v1549_v62, %v1484_v61  ;;  %v1575_v17 = vmul.f32 %v1484_v61, %v1484_v61  ;;  %v1589_v10 = vadd.f32 %v1588_v41, %v1574_v56  ;;  %v1518_v11 = vpop.f32.mrb[71].mxu1  ;;  %v1546_v56 = vld [vmem:[%s2879_s3] sm:$0x1] }
 0x183   :  { %1542 = vst [vmem:[%s2881_s2 + $0x60] sm:$0xff] %v1516_v2  ;;  %1537 = vst [vmem:[%s2881_s2 + $0x38] sm:$0xff] %v1495_v3  ;;  %v1527_v19 = vadd.f32 %v2069_v5, %v1430_v34  ;;  %v1487_v36 = vadd.f32 %v1486_v9, %v2775_v1  ;;  %v1519_v13 = vadd.f32 %v1518_v11, %v2791_v14 }
 0x184   :  { %v1590_v12 = vadd.f32 %v1589_v10, %v1575_v17  ;;  %v1578_v57 = vmul.f32 %v1495_v3, %v1495_v3  ;;  %v1583_v35 = vmul.f32 %v1516_v2, %v1516_v2 }
 0x185   :  { %1545 = vst [vmem:[%s2881_s2 + $0x78] sm:$0xff] %v1527_v19  ;;  %1535 = vst [vmem:[%s2881_s2 + $0x28] sm:$0xff] %v1487_v36  ;;  %v1551_v55 = vadd.f32 %v1550_v63, %v1487_v36  ;;  %v1576_v38 = vmul.f32 %v1487_v36, %v1487_v36  ;;  %v1584_v44 = vmul.f32 %v1519_v13, %v1519_v13 }
 0x186   :  { %1543 = vst [vmem:[%s2881_s2 + $0x68] sm:$0xff] %v1519_v13  ;;  %v1586_v48 = vmul.f32 %v1527_v19, %v1527_v19 }
 0x187   :  { %v1552_v16 = vadd.f32 %v1551_v55, %v1492_v58  ;;  %v1591_v1 = vadd.f32 %v1590_v12, %v1576_v38 }
 0x189   :  { %v1553_v18 = vadd.f32 %v1552_v16, %v1495_v3  ;;  %v1592_v14 = vadd.f32 %v1591_v1, %v1577_v15 }
 0x18b   :  { %v1554_v23 = vadd.f32 %v1553_v18, %v1500_v4  ;;  %v1593_v24 = vadd.f32 %v1592_v14, %v1578_v57  ;;  %v1585_v4 = vmul.f32 %v1524_v60, %v1524_v60 }
 0x18d   :  { %v1594_v30 = vadd.f32 %v1593_v24, %v1579_v21  ;;  %v1555_v52 = vadd.f32 %v1554_v23, %v1503_v47 }
 0x18f   :  { %v1556_v32 = vadd.f32 %v1555_v52, %v2796_v27  ;;  %v1595_v33 = vadd.f32 %v1594_v30, %v1580_v26 }
 0x191   :  { %v1557_v6 = vadd.f32 %v1556_v32, %v2810_v25  ;;  %v1596_v34 = vadd.f32 %v1595_v33, %v1581_v31 }
 0x193   :  { %v1558_v37 = vadd.f32 %v1557_v6, %v1516_v2  ;;  %v1597_v8 = vadd.f32 %v1596_v34, %v1582_v54 }
 0x195   :  { %v1559_v42 = vadd.f32 %v1558_v37, %v1519_v13  ;;  %v1598_v29 = vadd.f32 %v1597_v8, %v1583_v35 }
 0x197   :  { %v1560_v7 = vadd.f32 %v1559_v42, %v1524_v60  ;;  %v1599_v46 = vadd.f32 %v1598_v29, %v1584_v44 }
 0x199   :  { %v1561_v45 = vadd.f32 %v1560_v7, %v1527_v19  ;;  %v1600_v49 = vadd.f32 %v1599_v46, %v1585_v4 }
 0x19b   :  { %v1562_v27 = vrot.slane %v1561_v45, 4  ;;  %v1601_v47 = vadd.f32 %v1600_v49, %v1586_v48 }
 0x19d   :  { %v1563_v39 = vadd.f32 %v1562_v27, %v1561_v45  ;;  %v1602_v28 = vrot.slane %v1601_v47, 4 }
 0x19f   :  { %v1564_v50 = vrot.slane %v1563_v39, 2  ;;  %v1603_v51 = vadd.f32 %v1602_v28, %v1601_v47 }
 0x1a1   :  { %v1565_v25 = vadd.f32 %v1564_v50, %v1563_v39  ;;  %v1604_v53 = vrot.slane %v1603_v51, 2 }
 0x1a3   :  { %v1566_v20 = vrot.slane %v1565_v25, 1  ;;  %v1605_v40 = vadd.f32 %v1604_v53, %v1603_v51 }
 0x1a5   :  { %v1567_v58 = vadd.f32 %v1566_v20, %v1565_v25  ;;  %v1606_v59 = vrot.slane %v1605_v40, 1 }
 0x1a7   :  { %v1568_v41 = vadd.f32 %v1567_v58, %v1546_v56  ;;  %v1607_v60 = vadd.f32 %v1606_v59, %v1605_v40 }
 0x1a9   :  { %1569 = vst [vmem:[%s2879_s3] sm:$0x1] %v1568_v41  ;;  %v1608_v61 = vadd.f32 %v1607_v60, %v1570_v22 }
 0x1ab   :  { %1609 = vst [vmem:[%s2880_s4] sm:$0x1] %v1608_v61 }

// kernel: model_forward.5
= control target key start
LH: loop header
LB: loop body
LE: loop exit
PB: predicated region body
PF: predicated region fallthrough
CT: control target
= control target key end

     0   :  { %s678_s0 = inlined_call_operand.vmem [shape: f32[128,128], index: 0, kind: input, shape index: {}]   ;;  %s679_s1 = inlined_call_operand.vmem [shape: f32[2,128], index: 1, kind: input, shape index: {}]   ;;  %s680_s2 = inlined_call_operand.vmem [shape: f32[128,128], index: 2, kind: input, shape index: {}]   ;;  %s681_s3 = inlined_call_operand.vmem [shape: f32[2,128], index: 3, kind: input, shape index: {}]   ;;  %s682_s4 = inlined_call_operand.hbm [shape: f32[128,128], index: 4, kind: output, shape index: {}]  }
   0x1   :  { %v92_v0 = vld [vmem:[%s680_s2] sm:$0xff]  ;;  %v93_v1 = vld [vmem:[%s680_s2 + $0x8] sm:$0xff]  ;;  %v94_v2 = vld [vmem:[%s680_s2 + $0x10] sm:$0xff] }
   0x2   :  { %v419_v3 = vpack.c.bf16 %v93_v1, %v92_v0  ;;  %v95_v4 = vld [vmem:[%s680_s2 + $0x18] sm:$0xff]  ;;  %v96_v6 = vld [vmem:[%s680_s2 + $0x20] sm:$0xff]  ;;  %v97_v7 = vld [vmem:[%s680_s2 + $0x28] sm:$0xff] }
   0x3   :  { %v423_v5 = vpack.c.bf16 %v95_v4, %v94_v2  ;;  %v427_v8 = vpack.c.bf16 %v97_v7, %v96_v6  ;;  %v98_v9 = vld [vmem:[%s680_s2 + $0x30] sm:$0xff]  ;;  %v18_v10 = vld [vmem:[%s678_s0] sm:$0xff]  ;;  %v99_v12 = vld [vmem:[%s680_s2 + $0x38] sm:$0xff] }
   0x4   :  { %420 = vmatprep.subr.bf16.mxu0 %v419_v3  ;;  %451 = vmatprep.subr.bf16.mxu1 %v419_v3  ;;  %v549_v11 = vld [vmem:[%s679_s1] ss:$0 sm:$0xff]  ;;  %v558_v14 = vld [vmem:[%s679_s1 + $0x1] ss:$0 sm:$0xff]  ;;  %v431_v18 = vpack.c.bf16 %v99_v12, %v98_v9  ;;  %v101_v21 = vld [vmem:[%s680_s2 + $0x48] sm:$0xff] }
   0x5   :  { %422 = vmatpush3.bf16.msra.mxu0 %v419_v3  ;;  %459 = vmatpush3.bf16.msra.mxu1 %v419_v3  ;;  %v39_v13 = vmul.f32 %v549_v11, %v18_v10  ;;  %v26_v15 = vld [vmem:[%s678_s0 + $0x40] sm:$0xff] }
   0x6   :  { %424 = vmatprep.subr.bf16.mxu0 %v423_v5  ;;  %452 = vmatprep.subr.bf16.mxu1 %v423_v5  ;;  %v47_v16 = vmul.f32 %v549_v11, %v26_v15  ;;  %v100_v20 = vld [vmem:[%s680_s2 + $0x40] sm:$0xff] }
   0x7   :  { %v60_v17 = vadd.f32 %v558_v14, %v39_v13 }
   0x8   :  { %v68_v19 = vadd.f32 %v558_v14, %v47_v16 }
   0x9   :  { %426 = vmatpush3.bf16.msra.mxu0 %v423_v5  ;;  %460 = vmatpush3.bf16.msra.mxu1 %v423_v5  ;;  %v76_v22 = vmax.f32 %v60_v17, 0.0 }
   0xa   :  { %428 = vmatprep.subr.bf16.mxu0 %v427_v8  ;;  %453 = vmatprep.subr.bf16.mxu1 %v427_v8  ;;  %v84_v23 = vmax.f32 %v68_v19, 0.0 }
   0xb   :  { %9 = vsyncpa [#allocation3], 0  ;;  %v435_v24 = vpack.c.bf16 %v101_v21, %v100_v20  ;;  %v102_v25 = vld [vmem:[%s680_s2 + $0x50] sm:$0xff]  ;;  %v103_v26 = vld [vmem:[%s680_s2 + $0x58] sm:$0xff]  ;;  %395 = vmatprep.mubr.f32.mxu0 %v76_v22 }
   0xc   :  { %407 = vmatprep.mubr.f32.mxu1 %v84_v23  ;;  %v439_v27 = vpack.c.bf16 %v103_v26, %v102_v25  ;;  %v104_v28 = vld [vmem:[%s680_s2 + $0x60] sm:$0xff]  ;;  %v105_v29 = vld [vmem:[%s680_s2 + $0x68] sm:$0xff]  ;;  %v20_v32 = vld [vmem:[%s678_s0 + $0x10] sm:$0xff] }
   0xd   :  { %430 = vmatpush3.bf16.msra.mxu0 %v427_v8  ;;  %461 = vmatpush3.bf16.msra.mxu1 %v427_v8  ;;  %v19_v30 = vld [vmem:[%s678_s0 + $0x8] sm:$0xff]  ;;  %v443_v33 = vpack.c.bf16 %v105_v29, %v104_v28  ;;  %v28_v34 = vld [vmem:[%s678_s0 + $0x50] sm:$0xff]  ;;  %v107_v36 = vld [vmem:[%s680_s2 + $0x78] sm:$0xff]  ;;  %v41_v39 = vmul.f32 %v549_v11, %v20_v32 }
   0xe   :  { %432 = vmatprep.subr.bf16.mxu0 %v431_v18  ;;  %454 = vmatprep.subr.bf16.mxu1 %v431_v18  ;;  %v27_v31 = vld [vmem:[%s678_s0 + $0x48] sm:$0xff]  ;;  %v106_v35 = vld [vmem:[%s680_s2 + $0x70] sm:$0xff]  ;;  %v40_v37 = vmul.f32 %v549_v11, %v19_v30  ;;  %v21_v40 = vld [vmem:[%s678_s0 + $0x18] sm:$0xff]  ;;  %v49_v41 = vmul.f32 %v549_v11, %v28_v34 }
   0xf   :  { %v48_v38 = vmul.f32 %v549_v11, %v27_v31  ;;  %v29_v42 = vld [vmem:[%s678_s0 + $0x58] sm:$0xff]  ;;  %v22_v43 = vld [vmem:[%s678_s0 + $0x20] sm:$0xff]  ;;  %v447_v44 = vpack.c.bf16 %v107_v36, %v106_v35  ;;  %v42_v48 = vmul.f32 %v549_v11, %v21_v40  ;;  %v62_v49 = vadd.f32 %v558_v14, %v41_v39  ;;  %v23_v52 = vld [vmem:[%s678_s0 + $0x28] sm:$0xff] }
  0x10   :  { %v30_v45 = vld [vmem:[%s678_s0 + $0x60] sm:$0xff]  ;;  %v61_v46 = vadd.f32 %v558_v14, %v40_v37  ;;  %v50_v50 = vmul.f32 %v549_v11, %v29_v42  ;;  %v43_v51 = vmul.f32 %v549_v11, %v22_v43  ;;  %v70_v53 = vadd.f32 %v558_v14, %v49_v41  ;;  %v31_v55 = vld [vmem:[%s678_s0 + $0x68] sm:$0xff]  ;;  %v24_v56 = vld [vmem:[%s678_s0 + $0x30] sm:$0xff] }
  0x11   :  { %434 = vmatpush3.bf16.msra.mxu0 %v431_v18  ;;  %462 = vmatpush3.bf16.msra.mxu1 %v431_v18  ;;  %v69_v47 = vadd.f32 %v558_v14, %v48_v38  ;;  %v51_v54 = vmul.f32 %v549_v11, %v30_v45  ;;  %v32_v57 = vld [vmem:[%s678_s0 + $0x70] sm:$0xff]  ;;  %v63_v60 = vadd.f32 %v558_v14, %v42_v48  ;;  %v78_v62 = vmax.f32 %v62_v49, 0.0  ;;  %v25_v6 = vld [vmem:[%s678_s0 + $0x38] sm:$0xff] }
  0x12   :  { %436 = vmatprep.subr.bf16.mxu0 %v435_v24  ;;  %455 = vmatprep.subr.bf16.mxu1 %v435_v24  ;;  %v77_v58 = vmax.f32 %v61_v46, 0.0  ;;  %v44_v61 = vmul.f32 %v549_v11, %v23_v52  ;;  %v71_v63 = vadd.f32 %v558_v14, %v50_v50  ;;  %v64_v0 = vadd.f32 %v558_v14, %v43_v51  ;;  %v33_v7 = vld [vmem:[%s678_s0 + $0x78] sm:$0xff] }
  0x13   :  { %v85_v59 = vmax.f32 %v69_v47, 0.0  ;;  %v52_v1 = vmul.f32 %v549_v11, %v31_v55  ;;  %v86_v2 = vmax.f32 %v70_v53, 0.0  ;;  %v72_v3 = vadd.f32 %v558_v14, %v51_v54 }
  0x14   :  { %v45_v4 = vmul.f32 %v549_v11, %v24_v56  ;;  %v53_v5 = vmul.f32 %v549_v11, %v32_v57  ;;  %v79_v8 = vmax.f32 %v63_v60, 0.0  ;;  %v65_v9 = vadd.f32 %v558_v14, %v44_v61 }
  0x15   :  { %438 = vmatpush3.bf16.msra.mxu0 %v435_v24  ;;  %463 = vmatpush3.bf16.msra.mxu1 %v435_v24  ;;  %v87_v10 = vmax.f32 %v71_v63, 0.0  ;;  %v73_v12 = vadd.f32 %v558_v14, %v52_v1  ;;  %v46_v13 = vmul.f32 %v549_v11, %v25_v6  ;;  %v54_v15 = vmul.f32 %v549_v11, %v33_v7 }
  0x16   :  { %440 = vmatprep.subr.bf16.mxu0 %v439_v27  ;;  %456 = vmatprep.subr.bf16.mxu1 %v439_v27  ;;  %v80_v16 = vmax.f32 %v64_v0, 0.0  ;;  %v88_v17 = vmax.f32 %v72_v3, 0.0  ;;  %v66_v18 = vadd.f32 %v558_v14, %v45_v4  ;;  %v74_v19 = vadd.f32 %v558_v14, %v53_v5 }
  0x17   :  { %v81_v20 = vmax.f32 %v65_v9, 0.0  ;;  %v89_v21 = vmax.f32 %v73_v12, 0.0  ;;  %v67_v22 = vadd.f32 %v558_v14, %v46_v13  ;;  %v75_v23 = vadd.f32 %v558_v14, %v54_v15  ;;  %v330_v14 = vld [vmem:[%s681_s3 + $0x1] ss:$0 sm:$0xff] }
  0x18   :  { %v82_v24 = vmax.f32 %v66_v18, 0.0  ;;  %v90_v11 = vmax.f32 %v74_v19, 0.0 }
  0x19   :  { %442 = vmatpush3.bf16.msra.mxu0 %v439_v27  ;;  %464 = vmatpush3.bf16.msra.mxu1 %v439_v27  ;;  %v83_v25 = vmax.f32 %v67_v22, 0.0  ;;  %v91_v26 = vmax.f32 %v75_v23, 0.0  ;;  %v329_v27 = vld [vmem:[%s681_s3] ss:$0 sm:$0xff]  ;;  %s494_s3 = smov [#allocation2]  }
  0x1a   :  { %444 = vmatprep.subr.bf16.mxu0 %v443_v33  ;;  %457 = vmatprep.subr.bf16.mxu1 %v443_v33  ;;  %s316_s5 = sshll.u32 %s494_s3, 4  ;;  %s317_s5 = int_to_ptr.vmem [resolvable:$true] %s316_s5 }
  0x1b   :  { %s470_s6 = scalar_lea.vmem %s317_s5, 2048  ;;  %p475_p1 = scmp.lt.s32.totalorder %s317_s5, %s317_s5 }
  0x1c   :  { %p471_p0 = scmp.ne.s32.totalorder %s317_s5, %s470_s6  ;;  %p476_p2 = scmp.lt.s32.totalorder %s470_s6, %s470_s6 }
  0x1d   :  { %446 = vmatpush3.bf16.msra.mxu0 %v443_v33  ;;  %465 = vmatpush3.bf16.msra.mxu1 %v443_v33 }
  0x1e   :  { %448 = vmatprep.subr.bf16.mxu0 %v447_v44  ;;  %458 = vmatprep.subr.bf16.mxu1 %v447_v44  ;;  %p477_p3 = por %p476_p2, %p475_p1 }
  0x20   :  { %p478_p4 = pnand %p477_p3, %p471_p0 }
  0x21   :  { %450 = vmatpush3.bf16.msra.mxu0 %v447_v44  ;;  %466 = vmatpush3.bf16.msra.mxu1 %v447_v44 }
  0x24   :  { %396 = vmatmul.mubr.f32.vlgmr.msra.gmra.mrb[0].mxu0 %v77_v58  ;;  %408 = vmatmul.mubr.f32.vlgmr.msra.gmra.mrb[0].mxu1 %v85_v59 }
  0x25   :  { %398 = vmatprep.mubr.f32.mxu0 %v78_v62  ;;  %410 = vmatprep.mubr.f32.mxu1 %v86_v2 }
  0x28   :  { %399 = vmatmul.mubr.f32.gmra.mrb[2].mxu0 %v79_v8  ;;  %411 = vmatmul.mubr.f32.gmra.mrb[2].mxu1 %v87_v10 }
  0x29   :  { %401 = vmatprep.mubr.f32.mxu0 %v80_v16  ;;  %413 = vmatprep.mubr.f32.mxu1 %v88_v17 }
  0x2c   :  { %402 = vmatmul.mubr.f32.gmra.mrb[4].mxu0 %v81_v20  ;;  %414 = vmatmul.mubr.f32.gmra.mrb[4].mxu1 %v89_v21 }
  0x2d   :  { %404 = vmatprep.mubr.f32.mxu0 %v82_v24  ;;  %416 = vmatprep.mubr.f32.mxu1 %v90_v11 }
  0x30   :  { %405 = vmatmul.mubr.f32.gmra.mrb[6].mxu0 %v83_v25  ;;  %417 = vmatmul.mubr.f32.gmra.mrb[6].mxu1 %v91_v26 }
  0xf7   :  { %v397_v28 = vpop.f32.mrb[0].mxu0  ;;  %v409_v29 = vpop.f32.mrb[0].mxu1 }
  0xf8   :  { %v259_v30 = vmul.f32 %v397_v28, %v329_v27  ;;  %v267_v31 = vmul.f32 %v409_v29, %v329_v27  ;;  %v174_v32 = vpop.f32.mrb[1].mxu0  ;;  %v214_v33 = vpop.f32.mrb[1].mxu1 }
  0xf9   :  { %v258_v34 = vmul.f32 %v329_v27, %v174_v32  ;;  %v266_v35 = vmul.f32 %v329_v27, %v214_v33 }
  0xfa   :  { %v280_v36 = vadd.f32 %v330_v14, %v259_v30  ;;  %v288_v37 = vadd.f32 %v330_v14, %v267_v31 }
  0xfb   :  { %v279_v38 = vadd.f32 %v330_v14, %v258_v34  ;;  %v287_v39 = vadd.f32 %v330_v14, %v266_v35  ;;  %v400_v40 = vpop.f32.mrb[2].mxu0  ;;  %v412_v41 = vpop.f32.mrb[2].mxu1 }
  0xfc   :  { %296 = vst [vmem:[#allocation2 + $0x8] sm:$0xff] %v280_v36  ;;  %304 = vst [vmem:[#allocation2 + $0x48] sm:$0xff] %v288_v37  ;;  %v261_v42 = vmul.f32 %v400_v40, %v329_v27  ;;  %v269_v43 = vmul.f32 %v412_v41, %v329_v27  ;;  %v184_v44 = vpop.f32.mrb[3].mxu0  ;;  %v224_v45 = vpop.f32.mrb[3].mxu1 }
  0xfd   :  { %295 = vst [vmem:[#allocation2] sm:$0xff] %v279_v38  ;;  %303 = vst [vmem:[#allocation2 + $0x40] sm:$0xff] %v287_v39  ;;  %v260_v46 = vmul.f32 %v329_v27, %v184_v44  ;;  %v268_v47 = vmul.f32 %v329_v27, %v224_v45 }
  0xfe   :  { %v282_v48 = vadd.f32 %v330_v14, %v261_v42  ;;  %v290_v49 = vadd.f32 %v330_v14, %v269_v43 }
  0xff   :  { %v281_v50 = vadd.f32 %v330_v14, %v260_v46  ;;  %v289_v51 = vadd.f32 %v330_v14, %v268_v47  ;;  %v403_v52 = vpop.f32.mrb[4].mxu0  ;;  %v415_v53 = vpop.f32.mrb[4].mxu1 }
 0x100   :  { %298 = vst [vmem:[#allocation2 + $0x18] sm:$0xff] %v282_v48  ;;  %306 = vst [vmem:[#allocation2 + $0x58] sm:$0xff] %v290_v49  ;;  %v263_v54 = vmul.f32 %v403_v52, %v329_v27  ;;  %v271_v55 = vmul.f32 %v415_v53, %v329_v27  ;;  %v194_v56 = vpop.f32.mrb[5].mxu0  ;;  %v234_v57 = vpop.f32.mrb[5].mxu1 }
 0x101   :  { %297 = vst [vmem:[#allocation2 + $0x10] sm:$0xff] %v281_v50  ;;  %305 = vst [vmem:[#allocation2 + $0x50] sm:$0xff] %v289_v51  ;;  %v262_v58 = vmul.f32 %v329_v27, %v194_v56  ;;  %v270_v59 = vmul.f32 %v329_v27, %v234_v57 }
 0x102   :  { %v284_v60 = vadd.f32 %v330_v14, %v263_v54  ;;  %v292_v61 = vadd.f32 %v330_v14, %v271_v55 }
 0x103   :  { %v283_v62 = vadd.f32 %v330_v14, %v262_v58  ;;  %v291_v63 = vadd.f32 %v330_v14, %v270_v59  ;;  %v406_v0 = vpop.f32.mrb[6].mxu0  ;;  %v418_v1 = vpop.f32.mrb[6].mxu1 }
 0x104   :  { %300 = vst [vmem:[#allocation2 + $0x28] sm:$0xff] %v284_v60  ;;  %308 = vst [vmem:[#allocation2 + $0x68] sm:$0xff] %v292_v61  ;;  %v265_v2 = vmul.f32 %v406_v0, %v329_v27  ;;  %v273_v3 = vmul.f32 %v418_v1, %v329_v27  ;;  %v204_v4 = vpop.f32.mrb[7].mxu0  ;;  %v244_v5 = vpop.f32.mrb[7].mxu1 }
 0x105   :  { %299 = vst [vmem:[#allocation2 + $0x20] sm:$0xff] %v283_v62  ;;  %307 = vst [vmem:[#allocation2 + $0x60] sm:$0xff] %v291_v63  ;;  %v264_v6 = vmul.f32 %v329_v27, %v204_v4  ;;  %v272_v7 = vmul.f32 %v329_v27, %v244_v5 }
 0x106   :  { %v286_v8 = vadd.f32 %v330_v14, %v265_v2  ;;  %v294_v9 = vadd.f32 %v330_v14, %v273_v3 }
 0x107   :  { %v285_v10 = vadd.f32 %v330_v14, %v264_v6  ;;  %v293_v12 = vadd.f32 %v330_v14, %v272_v7 }
 0x108   :  { %302 = vst [vmem:[#allocation2 + $0x38] sm:$0xff] %v286_v8  ;;  %310 = vst [vmem:[#allocation2 + $0x78] sm:$0xff] %v294_v9 }
 0x109   :  { %301 = vst [vmem:[#allocation2 + $0x30] sm:$0xff] %v285_v10  ;;  %309 = vst [vmem:[#allocation2 + $0x70] sm:$0xff] %v293_v12 }
 0x10a   :  { %481 = shalt.err (!%p478_p4)
}
 0x10b   :  { %s482_s9 = scalar_lea.hbm %s682_s4, 2048 }
 0x10c   :  { %p483_p5 = scmp.ne.s32.totalorder %s682_s4, %s482_s9  ;;  %p486_p6 = scmp.lt.u32.totalorder %s482_s9, %s682_s4 }
 0x10e   :  { %p488_p7 = pnand %p486_p6, %p483_p5 }
 0x110   :  { %491 = shalt.err (!%p488_p7)
}
 0x111   :  { %s495_s14 = smov 128   ;;  %s496_s2 = smov 8  }
 0x112   :  { %322 = dma.vmem_to_hbm [thread:$0]  %s317_s5, 2048, %s682_s4, [#allocation3], %s495_s14, %s495_s14, %s496_s2  }
 0x113   :  { %492 = dma.done.wait [#allocation3], 2048  }
 0x114   :  { %493 = vsyncadd [#allocation3], 4294965248 }
 0x115   :  { %326 = vsyncpa [#allocation3], 1 }

</bundles_post_ra>
